<compile_context>
chip_gen: v7x
topology: tpu7x:2x2x1
jax: 0.10.0
libtpu: 0.0.40
codegen_flags: <defaults>
</compile_context>

<pallas_src>
import functools

import jax
import jax.numpy as jnp
from jax import lax
from jax.experimental import pallas as pl
from jax.experimental.pallas import tpu as pltpu

EPS = 1e-5

# Tap order for a 3x3 "same" conv on the flattened (row-major) spatial axis.
_TAPS = [(dh, dw) for dh in (-1, 0, 1) for dw in (-1, 0, 1)]


def _resnet_module_kernel(x_ref, w_ref, p_ref, m_ref, o_ref, *,
                          H, W, C, leakiness, conv_dtype, use_mxu):
    """One sample per grid step, (C, H*W) lane-dense layout.

    x_ref : (1, C, HW)   activation block (NCHW memory, spatial on lanes)
    w_ref : (9, C, C)    conv weight per tap, [tap, c_out, c_in]
    p_ref : (C, 3)       packed [bias, gamma, beta] columns (f32)
    m_ref : (9, HW)      per-tap validity masks in {0, 1} (f32)
    o_ref : (1, C, HW)   output block
    """
    HW = H * W

    w_all = w_ref[...]               # (9, C, C); conv_dtype (MXU path) or f32
    params = p_ref[...]              # (C, 3) f32
    bias = params[:, 0:1]            # (C, 1)
    gamma = params[:, 1:2]
    beta = params[:, 2:3]
    masks = m_ref[...]               # (9, HW) f32

    def shifted_tap(x_f32, t):
        """x shifted by tap t; out-of-image positions zeroed (f32, (C, HW))."""
        dh, dw = _TAPS[t]
        off = dh * W + dw
        if off == 0:
            return x_f32
        rolled = pltpu.roll(x_f32, shift=(-off) % HW, axis=1)
        return rolled * masks[t:t + 1, :]

    if use_mxu:
        # Large-C path: 9 accumulated (C,C)x(C,HW) matmuls, f32 accumulation.
        def conv3x3(x_f32):
            acc = jnp.zeros((C, HW), jnp.float32)
            for t in range(9):
                tap = shifted_tap(x_f32, t).astype(conv_dtype)
                acc = acc + jnp.dot(w_all[t], tap,
                                    preferred_element_type=jnp.float32)
            return acc + bias
    else:
        # Small-C path: pure-VPU broadcast MACs (no MXU, no im2col slab).
        def conv3x3(x_f32):
            acc = jnp.broadcast_to(bias, (C, HW))
            for t in range(9):
                tap = shifted_tap(x_f32, t)
                w_t = w_all[t].astype(jnp.float32)        # (C_out, C_in)
                for ci in range(C):
                    acc = acc + w_t[:, ci:ci + 1] * tap[ci:ci + 1, :]
            return acc

    inv_hw = 1.0 / float(HW)

    def inst_norm(y):
        # Single-pass stats: sum & sum-of-squares, var = E[y^2] - E[y]^2,
        # then fused per-channel scale/shift (only two lane broadcasts).
        mean = jnp.sum(y, axis=1, keepdims=True) * inv_hw
        mean_sq = jnp.sum(y * y, axis=1, keepdims=True) * inv_hw
        var = mean_sq - mean * mean
        scale = lax.rsqrt(var + EPS) * gamma              # (C, 1)
        shift = beta - mean * scale                       # (C, 1)
        return y * scale + shift

    def lrelu(y):
        return jnp.where(y >= 0, y, leakiness * y)

    x0 = x_ref[0].astype(jnp.float32)                     # (C, HW)
    y = lrelu(inst_norm(conv3x3(x0)))
    y = inst_norm(conv3x3(y))
    # Re-read the residual from VMEM (cheap vld) instead of keeping it live
    # across both convs/norms.
    y = lrelu(y + x_ref[0].astype(jnp.float32))
    o_ref[0] = y.astype(o_ref.dtype)


def resnet_module_forward(x_nchw, w_oihw, bias, gamma, beta, *,
                          leakiness=0.01, conv_dtype=None,
                          mxu_min_channels=64):
    """NCHW in / NCHW out. Only free reshapes on the activation tensor."""
    N, C, H, W = x_nchw.shape
    HW = H * W
    assert HW % 128 == 0, (
        "H*W must be a multiple of 128 for the lane-dense layout "
        "(TODO(synk): pad odd spatial sizes explicitly).")

    use_mxu = C >= mxu_min_channels
    if conv_dtype is None:
        # bf16 MXU operands are native on v5e/v6e/v7x; the VPU path stays f32.
        conv_dtype = jnp.bfloat16 if use_mxu else jnp.float32

    x_flat = x_nchw.reshape(N, C, HW)                     # free (row-major)
    # OIHW -> (kh, kw, c_out, c_in) -> (9, C, C); cast in the wrapper so the
    # weight DMA already carries the MXU operand dtype.
    w_taps = jnp.transpose(w_oihw, (2, 3, 0, 1)).reshape(9, C, C).astype(
        conv_dtype if use_mxu else jnp.float32)
    params = jnp.stack([bias, gamma, beta], axis=1).astype(jnp.float32)  # (C,3)

    # Per-tap boundary-validity masks, computed once outside the kernel and
    # kept resident in VMEM (constant index_map).
    hh = jnp.arange(HW, dtype=jnp.int32) // W
    ww = jnp.arange(HW, dtype=jnp.int32) % W
    mask_rows = []
    for dh, dw in _TAPS:
        valid = ((hh + dh >= 0) & (hh + dh < H) &
                 (ww + dw >= 0) & (ww + dw < W))
        mask_rows.append(valid.astype(jnp.float32))
    masks = jnp.stack(mask_rows, axis=0)                  # (9, HW)

    kernel = functools.partial(
        _resnet_module_kernel, H=H, W=W, C=C, leakiness=leakiness,
        conv_dtype=conv_dtype, use_mxu=use_mxu)

    out_flat = pl.pallas_call(
        kernel,
        out_shape=jax.ShapeDtypeStruct((N, C, HW), x_nchw.dtype),
        grid_spec=pltpu.PrefetchScalarGridSpec(
            num_scalar_prefetch=0,
            grid=(N,),                       # >= 2 parallel steps -> both v7x TCs
            in_specs=[
                pl.BlockSpec((1, C, HW), lambda n: (n, 0, 0)),
                pl.BlockSpec((9, C, C), lambda n: (0, 0, 0)),
                pl.BlockSpec((C, 3), lambda n: (0, 0)),
                pl.BlockSpec((9, HW), lambda n: (0, 0)),
            ],
            out_specs=pl.BlockSpec((1, C, HW), lambda n: (n, 0, 0)),
        ),
        compiler_params=pltpu.CompilerParams(
            dimension_semantics=("parallel",)),
    )(x_flat, w_taps, params, masks)
    return out_flat.reshape(N, C, H, W)                   # free reshape


def reference_forward(x, w_oihw, bias, gamma, beta, leakiness=0.01):
    """Pure-JAX reference (mirrors the PyTorch module, training-mode norm)."""
    def conv(inp):
        out = lax.conv_general_dilated(
            inp, w_oihw, window_strides=(1, 1), padding=((1, 1), (1, 1)),
            dimension_numbers=("NCHW", "OIHW", "NCHW"))
        return out + bias[None, :, None, None]

    def inorm(y):
        mean = jnp.mean(y, axis=(2, 3), keepdims=True)
        var = jnp.mean((y - mean) ** 2, axis=(2, 3), keepdims=True)
        y_hat = (y - mean) / jnp.sqrt(var + EPS)
        return y_hat * gamma[None, :, None, None] + beta[None, :, None, None]

    def lrelu(y):
        return jnp.where(y >= 0, y, leakiness * y)

    skip = x
    y = lrelu(inorm(conv(x)))
    y = inorm(conv(y))
    return lrelu(y + skip)


if __name__ == "__main__":
    # Conv is C->C, so the input already has `output_channels` channels.
    N, C, H, W = 2, 4, 16, 16

    key = jax.random.PRNGKey(0)
    kx, kw, kb, kg, kbeta = jax.random.split(key, 5)

    x = jax.random.normal(kx, (N, C, H, W), dtype=jnp.float32)
    conv_w = 0.1 * jax.random.normal(kw, (C, C, 3, 3), dtype=jnp.float32)  # OIHW
    conv_b = 0.1 * jax.random.normal(kb, (C,), dtype=jnp.float32)
    gamma = 1.0 + 0.1 * jax.random.normal(kg, (C,), dtype=jnp.float32)
    beta = 0.1 * jax.random.normal(kbeta, (C,), dtype=jnp.float32)

    ref = jax.block_until_ready(reference_forward(x, conv_w, conv_b, gamma, beta))

    # Default path at C=4: pure-VPU conv, f32 throughout (tight check).
    out = jax.block_until_ready(
        resnet_module_forward(x, conv_w, conv_b, gamma, beta))
    assert out.shape == (N, C, H, W)
    err = jnp.max(jnp.abs(out - ref))
    assert jnp.allclose(out, ref, atol=1e-3, rtol=1e-3), (
        f"vpu path max abs err {err}")

    # Large-C formulation exercised at the same small shape: 9 accumulated
    # bf16 matmuls with f32 accumulation (looser tolerance for bf16 operands).
    out_mxu = jax.block_until_ready(
        resnet_module_forward(x, conv_w, conv_b, gamma, beta,
                              conv_dtype=jnp.bfloat16, mxu_min_channels=1))
    err_mxu = jnp.max(jnp.abs(out_mxu - ref))
    assert jnp.allclose(out_mxu, ref, atol=3e-2, rtol=3e-2), (
        f"mxu path max abs err {err_mxu}")

    print("KERNEL_OK")
</pallas_src>

<mosaic_0001>
module attributes {stable_mosaic.version = 11 : i64} {
  func.func @_resnet_module_kernel(%arg0: i32, %arg1: memref<1x4x256xf32, #tpu.memory_space<vmem>>, %arg2: memref<9x4x4xf32, #tpu.memory_space<vmem>>, %arg3: memref<4x3xf32, #tpu.memory_space<vmem>>, %arg4: memref<9x256xf32, #tpu.memory_space<vmem>>, %arg5: memref<1x4x256xf32, #tpu.memory_space<vmem>>) attributes {dimension_semantics = [#tpu.dimension_semantics<parallel>], iteration_bounds = array<i64: 2>, scalar_prefetch = 0 : i64, scratch_operands = 0 : i64, tpu.core_type = #tpu.core_type<tc>, window_params = [{transform_indices = @transform_0, window_bounds = array<i64: 1, 4, 256>}, {pipeline_mode = #tpu.pipeline_mode<synchronous>, transform_indices = @transform_1, window_bounds = array<i64: 9, 4, 4>}, {pipeline_mode = #tpu.pipeline_mode<synchronous>, transform_indices = @transform_2, window_bounds = array<i64: 4, 3>}, {pipeline_mode = #tpu.pipeline_mode<synchronous>, transform_indices = @transform_3, window_bounds = array<i64: 9, 256>}, {transform_indices = @transform_4, window_bounds = array<i64: 1, 4, 256>}]} {
    %c0 = arith.constant 0 : index
    %c0_0 = arith.constant 0 : index
    %c0_1 = arith.constant 0 : index
    %0 = vector.load %arg2[%c0, %c0_0, %c0_1] : memref<9x4x4xf32, #tpu.memory_space<vmem>>, vector<9x4x4xf32>
    %c0_2 = arith.constant 0 : index
    %c0_3 = arith.constant 0 : index
    %1 = vector.load %arg3[%c0_2, %c0_3] : memref<4x3xf32, #tpu.memory_space<vmem>>, vector<4x3xf32>
    %2 = vector.extract_strided_slice %1 {offsets = [0, 0], sizes = [4, 1], strides = [1, 1]} : vector<4x3xf32> to vector<4x1xf32>
    %3 = vector.extract_strided_slice %1 {offsets = [0, 1], sizes = [4, 1], strides = [1, 1]} : vector<4x3xf32> to vector<4x1xf32>
    %4 = vector.extract_strided_slice %1 {offsets = [0, 2], sizes = [4, 1], strides = [1, 1]} : vector<4x3xf32> to vector<4x1xf32>
    %c0_4 = arith.constant 0 : index
    %c0_5 = arith.constant 0 : index
    %5 = vector.load %arg4[%c0_4, %c0_5] : memref<9x256xf32, #tpu.memory_space<vmem>>, vector<9x256xf32>
    %c0_6 = arith.constant 0 : index
    %c0_7 = arith.constant 0 : index
    %c0_8 = arith.constant 0 : index
    %6 = vector.load %arg1[%c0_6, %c0_7, %c0_8] : memref<1x4x256xf32, #tpu.memory_space<vmem>>, vector<1x4x256xf32>
    %7 = vector.shape_cast %6 : vector<1x4x256xf32> to vector<4x256xf32>
    %8 = vector.shape_cast %2 : vector<4x1xf32> to vector<4x1xf32>
    %9 = vector.broadcast %8 : vector<4x1xf32> to vector<4x256xf32>
    %c17_i32 = arith.constant 17 : i32
    %10 = tpu.dynamic_rotate %7 by %c17_i32 dim 1 : vector<4x256xf32>, i32 -> vector<4x256xf32>
    %11 = vector.extract_strided_slice %5 {offsets = [0, 0], sizes = [1, 256], strides = [1, 1]} : vector<9x256xf32> to vector<1x256xf32>
    %12 = vector.broadcast %11 : vector<1x256xf32> to vector<4x256xf32>
    %13 = arith.mulf %10, %12 : vector<4x256xf32>
    %14 = vector.extract_strided_slice %0 {offsets = [0, 0, 0], sizes = [1, 4, 4], strides = [1, 1, 1]} : vector<9x4x4xf32> to vector<1x4x4xf32>
    %15 = vector.shape_cast %14 : vector<1x4x4xf32> to vector<4x4xf32>
    %16 = vector.extract_strided_slice %15 {offsets = [0, 0], sizes = [4, 1], strides = [1, 1]} : vector<4x4xf32> to vector<4x1xf32>
    %17 = vector.extract_strided_slice %13 {offsets = [0, 0], sizes = [1, 256], strides = [1, 1]} : vector<4x256xf32> to vector<1x256xf32>
    %18 = vector.broadcast %16 : vector<4x1xf32> to vector<4x256xf32>
    %19 = vector.broadcast %17 : vector<1x256xf32> to vector<4x256xf32>
    %20 = arith.mulf %18, %19 : vector<4x256xf32>
    %21 = arith.addf %9, %20 : vector<4x256xf32>
    %22 = vector.extract_strided_slice %15 {offsets = [0, 1], sizes = [4, 1], strides = [1, 1]} : vector<4x4xf32> to vector<4x1xf32>
    %23 = vector.extract_strided_slice %13 {offsets = [1, 0], sizes = [1, 256], strides = [1, 1]} : vector<4x256xf32> to vector<1x256xf32>
    %24 = vector.broadcast %22 : vector<4x1xf32> to vector<4x256xf32>
    %25 = vector.broadcast %23 : vector<1x256xf32> to vector<4x256xf32>
    %26 = arith.mulf %24, %25 : vector<4x256xf32>
    %27 = arith.addf %21, %26 : vector<4x256xf32>
    %28 = vector.extract_strided_slice %15 {offsets = [0, 2], sizes = [4, 1], strides = [1, 1]} : vector<4x4xf32> to vector<4x1xf32>
    %29 = vector.extract_strided_slice %13 {offsets = [2, 0], sizes = [1, 256], strides = [1, 1]} : vector<4x256xf32> to vector<1x256xf32>
    %30 = vector.broadcast %28 : vector<4x1xf32> to vector<4x256xf32>
    %31 = vector.broadcast %29 : vector<1x256xf32> to vector<4x256xf32>
    %32 = arith.mulf %30, %31 : vector<4x256xf32>
    %33 = arith.addf %27, %32 : vector<4x256xf32>
    %34 = vector.extract_strided_slice %15 {offsets = [0, 3], sizes = [4, 1], strides = [1, 1]} : vector<4x4xf32> to vector<4x1xf32>
    %35 = vector.extract_strided_slice %13 {offsets = [3, 0], sizes = [1, 256], strides = [1, 1]} : vector<4x256xf32> to vector<1x256xf32>
    %36 = vector.broadcast %34 : vector<4x1xf32> to vector<4x256xf32>
    %37 = vector.broadcast %35 : vector<1x256xf32> to vector<4x256xf32>
    %38 = arith.mulf %36, %37 : vector<4x256xf32>
    %39 = arith.addf %33, %38 : vector<4x256xf32>
    %c16_i32 = arith.constant 16 : i32
    %40 = tpu.dynamic_rotate %7 by %c16_i32 dim 1 : vector<4x256xf32>, i32 -> vector<4x256xf32>
    %41 = vector.extract_strided_slice %5 {offsets = [1, 0], sizes = [1, 256], strides = [1, 1]} : vector<9x256xf32> to vector<1x256xf32>
    %42 = vector.broadcast %41 : vector<1x256xf32> to vector<4x256xf32>
    %43 = arith.mulf %40, %42 : vector<4x256xf32>
    %44 = vector.extract_strided_slice %0 {offsets = [1, 0, 0], sizes = [1, 4, 4], strides = [1, 1, 1]} : vector<9x4x4xf32> to vector<1x4x4xf32>
    %45 = vector.shape_cast %44 : vector<1x4x4xf32> to vector<4x4xf32>
    %46 = vector.extract_strided_slice %45 {offsets = [0, 0], sizes = [4, 1], strides = [1, 1]} : vector<4x4xf32> to vector<4x1xf32>
    %47 = vector.extract_strided_slice %43 {offsets = [0, 0], sizes = [1, 256], strides = [1, 1]} : vector<4x256xf32> to vector<1x256xf32>
    %48 = vector.broadcast %46 : vector<4x1xf32> to vector<4x256xf32>
    %49 = vector.broadcast %47 : vector<1x256xf32> to vector<4x256xf32>
    %50 = arith.mulf %48, %49 : vector<4x256xf32>
    %51 = arith.addf %39, %50 : vector<4x256xf32>
    %52 = vector.extract_strided_slice %45 {offsets = [0, 1], sizes = [4, 1], strides = [1, 1]} : vector<4x4xf32> to vector<4x1xf32>
    %53 = vector.extract_strided_slice %43 {offsets = [1, 0], sizes = [1, 256], strides = [1, 1]} : vector<4x256xf32> to vector<1x256xf32>
    %54 = vector.broadcast %52 : vector<4x1xf32> to vector<4x256xf32>
    %55 = vector.broadcast %53 : vector<1x256xf32> to vector<4x256xf32>
    %56 = arith.mulf %54, %55 : vector<4x256xf32>
    %57 = arith.addf %51, %56 : vector<4x256xf32>
    %58 = vector.extract_strided_slice %45 {offsets = [0, 2], sizes = [4, 1], strides = [1, 1]} : vector<4x4xf32> to vector<4x1xf32>
    %59 = vector.extract_strided_slice %43 {offsets = [2, 0], sizes = [1, 256], strides = [1, 1]} : vector<4x256xf32> to vector<1x256xf32>
    %60 = vector.broadcast %58 : vector<4x1xf32> to vector<4x256xf32>
    %61 = vector.broadcast %59 : vector<1x256xf32> to vector<4x256xf32>
    %62 = arith.mulf %60, %61 : vector<4x256xf32>
    %63 = arith.addf %57, %62 : vector<4x256xf32>
    %64 = vector.extract_strided_slice %45 {offsets = [0, 3], sizes = [4, 1], strides = [1, 1]} : vector<4x4xf32> to vector<4x1xf32>
    %65 = vector.extract_strided_slice %43 {offsets = [3, 0], sizes = [1, 256], strides = [1, 1]} : vector<4x256xf32> to vector<1x256xf32>
    %66 = vector.broadcast %64 : vector<4x1xf32> to vector<4x256xf32>
    %67 = vector.broadcast %65 : vector<1x256xf32> to vector<4x256xf32>
    %68 = arith.mulf %66, %67 : vector<4x256xf32>
    %69 = arith.addf %63, %68 : vector<4x256xf32>
    %c15_i32 = arith.constant 15 : i32
    %70 = tpu.dynamic_rotate %7 by %c15_i32 dim 1 : vector<4x256xf32>, i32 -> vector<4x256xf32>
    %71 = vector.extract_strided_slice %5 {offsets = [2, 0], sizes = [1, 256], strides = [1, 1]} : vector<9x256xf32> to vector<1x256xf32>
    %72 = vector.broadcast %71 : vector<1x256xf32> to vector<4x256xf32>
    %73 = arith.mulf %70, %72 : vector<4x256xf32>
    %74 = vector.extract_strided_slice %0 {offsets = [2, 0, 0], sizes = [1, 4, 4], strides = [1, 1, 1]} : vector<9x4x4xf32> to vector<1x4x4xf32>
    %75 = vector.shape_cast %74 : vector<1x4x4xf32> to vector<4x4xf32>
    %76 = vector.extract_strided_slice %75 {offsets = [0, 0], sizes = [4, 1], strides = [1, 1]} : vector<4x4xf32> to vector<4x1xf32>
    %77 = vector.extract_strided_slice %73 {offsets = [0, 0], sizes = [1, 256], strides = [1, 1]} : vector<4x256xf32> to vector<1x256xf32>
    %78 = vector.broadcast %76 : vector<4x1xf32> to vector<4x256xf32>
    %79 = vector.broadcast %77 : vector<1x256xf32> to vector<4x256xf32>
    %80 = arith.mulf %78, %79 : vector<4x256xf32>
    %81 = arith.addf %69, %80 : vector<4x256xf32>
    %82 = vector.extract_strided_slice %75 {offsets = [0, 1], sizes = [4, 1], strides = [1, 1]} : vector<4x4xf32> to vector<4x1xf32>
    %83 = vector.extract_strided_slice %73 {offsets = [1, 0], sizes = [1, 256], strides = [1, 1]} : vector<4x256xf32> to vector<1x256xf32>
    %84 = vector.broadcast %82 : vector<4x1xf32> to vector<4x256xf32>
    %85 = vector.broadcast %83 : vector<1x256xf32> to vector<4x256xf32>
    %86 = arith.mulf %84, %85 : vector<4x256xf32>
    %87 = arith.addf %81, %86 : vector<4x256xf32>
    %88 = vector.extract_strided_slice %75 {offsets = [0, 2], sizes = [4, 1], strides = [1, 1]} : vector<4x4xf32> to vector<4x1xf32>
    %89 = vector.extract_strided_slice %73 {offsets = [2, 0], sizes = [1, 256], strides = [1, 1]} : vector<4x256xf32> to vector<1x256xf32>
    %90 = vector.broadcast %88 : vector<4x1xf32> to vector<4x256xf32>
    %91 = vector.broadcast %89 : vector<1x256xf32> to vector<4x256xf32>
    %92 = arith.mulf %90, %91 : vector<4x256xf32>
    %93 = arith.addf %87, %92 : vector<4x256xf32>
    %94 = vector.extract_strided_slice %75 {offsets = [0, 3], sizes = [4, 1], strides = [1, 1]} : vector<4x4xf32> to vector<4x1xf32>
    %95 = vector.extract_strided_slice %73 {offsets = [3, 0], sizes = [1, 256], strides = [1, 1]} : vector<4x256xf32> to vector<1x256xf32>
    %96 = vector.broadcast %94 : vector<4x1xf32> to vector<4x256xf32>
    %97 = vector.broadcast %95 : vector<1x256xf32> to vector<4x256xf32>
    %98 = arith.mulf %96, %97 : vector<4x256xf32>
    %99 = arith.addf %93, %98 : vector<4x256xf32>
    %c1_i32 = arith.constant 1 : i32
    %100 = tpu.dynamic_rotate %7 by %c1_i32 dim 1 : vector<4x256xf32>, i32 -> vector<4x256xf32>
    %101 = vector.extract_strided_slice %5 {offsets = [3, 0], sizes = [1, 256], strides = [1, 1]} : vector<9x256xf32> to vector<1x256xf32>
    %102 = vector.broadcast %101 : vector<1x256xf32> to vector<4x256xf32>
    %103 = arith.mulf %100, %102 : vector<4x256xf32>
    %104 = vector.extract_strided_slice %0 {offsets = [3, 0, 0], sizes = [1, 4, 4], strides = [1, 1, 1]} : vector<9x4x4xf32> to vector<1x4x4xf32>
    %105 = vector.shape_cast %104 : vector<1x4x4xf32> to vector<4x4xf32>
    %106 = vector.extract_strided_slice %105 {offsets = [0, 0], sizes = [4, 1], strides = [1, 1]} : vector<4x4xf32> to vector<4x1xf32>
    %107 = vector.extract_strided_slice %103 {offsets = [0, 0], sizes = [1, 256], strides = [1, 1]} : vector<4x256xf32> to vector<1x256xf32>
    %108 = vector.broadcast %106 : vector<4x1xf32> to vector<4x256xf32>
    %109 = vector.broadcast %107 : vector<1x256xf32> to vector<4x256xf32>
    %110 = arith.mulf %108, %109 : vector<4x256xf32>
    %111 = arith.addf %99, %110 : vector<4x256xf32>
    %112 = vector.extract_strided_slice %105 {offsets = [0, 1], sizes = [4, 1], strides = [1, 1]} : vector<4x4xf32> to vector<4x1xf32>
    %113 = vector.extract_strided_slice %103 {offsets = [1, 0], sizes = [1, 256], strides = [1, 1]} : vector<4x256xf32> to vector<1x256xf32>
    %114 = vector.broadcast %112 : vector<4x1xf32> to vector<4x256xf32>
    %115 = vector.broadcast %113 : vector<1x256xf32> to vector<4x256xf32>
    %116 = arith.mulf %114, %115 : vector<4x256xf32>
    %117 = arith.addf %111, %116 : vector<4x256xf32>
    %118 = vector.extract_strided_slice %105 {offsets = [0, 2], sizes = [4, 1], strides = [1, 1]} : vector<4x4xf32> to vector<4x1xf32>
    %119 = vector.extract_strided_slice %103 {offsets = [2, 0], sizes = [1, 256], strides = [1, 1]} : vector<4x256xf32> to vector<1x256xf32>
    %120 = vector.broadcast %118 : vector<4x1xf32> to vector<4x256xf32>
    %121 = vector.broadcast %119 : vector<1x256xf32> to vector<4x256xf32>
    %122 = arith.mulf %120, %121 : vector<4x256xf32>
    %123 = arith.addf %117, %122 : vector<4x256xf32>
    %124 = vector.extract_strided_slice %105 {offsets = [0, 3], sizes = [4, 1], strides = [1, 1]} : vector<4x4xf32> to vector<4x1xf32>
    %125 = vector.extract_strided_slice %103 {offsets = [3, 0], sizes = [1, 256], strides = [1, 1]} : vector<4x256xf32> to vector<1x256xf32>
    %126 = vector.broadcast %124 : vector<4x1xf32> to vector<4x256xf32>
    %127 = vector.broadcast %125 : vector<1x256xf32> to vector<4x256xf32>
    %128 = arith.mulf %126, %127 : vector<4x256xf32>
    %129 = arith.addf %123, %128 : vector<4x256xf32>
    %130 = vector.extract_strided_slice %0 {offsets = [4, 0, 0], sizes = [1, 4, 4], strides = [1, 1, 1]} : vector<9x4x4xf32> to vector<1x4x4xf32>
    %131 = vector.shape_cast %130 : vector<1x4x4xf32> to vector<4x4xf32>
    %132 = vector.extract_strided_slice %131 {offsets = [0, 0], sizes = [4, 1], strides = [1, 1]} : vector<4x4xf32> to vector<4x1xf32>
    %133 = vector.extract_strided_slice %7 {offsets = [0, 0], sizes = [1, 256], strides = [1, 1]} : vector<4x256xf32> to vector<1x256xf32>
    %134 = vector.broadcast %132 : vector<4x1xf32> to vector<4x256xf32>
    %135 = vector.broadcast %133 : vector<1x256xf32> to vector<4x256xf32>
    %136 = arith.mulf %134, %135 : vector<4x256xf32>
    %137 = arith.addf %129, %136 : vector<4x256xf32>
    %138 = vector.extract_strided_slice %131 {offsets = [0, 1], sizes = [4, 1], strides = [1, 1]} : vector<4x4xf32> to vector<4x1xf32>
    %139 = vector.extract_strided_slice %7 {offsets = [1, 0], sizes = [1, 256], strides = [1, 1]} : vector<4x256xf32> to vector<1x256xf32>
    %140 = vector.broadcast %138 : vector<4x1xf32> to vector<4x256xf32>
    %141 = vector.broadcast %139 : vector<1x256xf32> to vector<4x256xf32>
    %142 = arith.mulf %140, %141 : vector<4x256xf32>
    %143 = arith.addf %137, %142 : vector<4x256xf32>
    %144 = vector.extract_strided_slice %131 {offsets = [0, 2], sizes = [4, 1], strides = [1, 1]} : vector<4x4xf32> to vector<4x1xf32>
    %145 = vector.extract_strided_slice %7 {offsets = [2, 0], sizes = [1, 256], strides = [1, 1]} : vector<4x256xf32> to vector<1x256xf32>
    %146 = vector.broadcast %144 : vector<4x1xf32> to vector<4x256xf32>
    %147 = vector.broadcast %145 : vector<1x256xf32> to vector<4x256xf32>
    %148 = arith.mulf %146, %147 : vector<4x256xf32>
    %149 = arith.addf %143, %148 : vector<4x256xf32>
    %150 = vector.extract_strided_slice %131 {offsets = [0, 3], sizes = [4, 1], strides = [1, 1]} : vector<4x4xf32> to vector<4x1xf32>
    %151 = vector.extract_strided_slice %7 {offsets = [3, 0], sizes = [1, 256], strides = [1, 1]} : vector<4x256xf32> to vector<1x256xf32>
    %152 = vector.broadcast %150 : vector<4x1xf32> to vector<4x256xf32>
    %153 = vector.broadcast %151 : vector<1x256xf32> to vector<4x256xf32>
    %154 = arith.mulf %152, %153 : vector<4x256xf32>
    %155 = arith.addf %149, %154 : vector<4x256xf32>
    %c255_i32 = arith.constant 255 : i32
    %156 = tpu.dynamic_rotate %7 by %c255_i32 dim 1 : vector<4x256xf32>, i32 -> vector<4x256xf32>
    %157 = vector.extract_strided_slice %5 {offsets = [5, 0], sizes = [1, 256], strides = [1, 1]} : vector<9x256xf32> to vector<1x256xf32>
    %158 = vector.broadcast %157 : vector<1x256xf32> to vector<4x256xf32>
    %159 = arith.mulf %156, %158 : vector<4x256xf32>
    %160 = vector.extract_strided_slice %0 {offsets = [5, 0, 0], sizes = [1, 4, 4], strides = [1, 1, 1]} : vector<9x4x4xf32> to vector<1x4x4xf32>
    %161 = vector.shape_cast %160 : vector<1x4x4xf32> to vector<4x4xf32>
    %162 = vector.extract_strided_slice %161 {offsets = [0, 0], sizes = [4, 1], strides = [1, 1]} : vector<4x4xf32> to vector<4x1xf32>
    %163 = vector.extract_strided_slice %159 {offsets = [0, 0], sizes = [1, 256], strides = [1, 1]} : vector<4x256xf32> to vector<1x256xf32>
    %164 = vector.broadcast %162 : vector<4x1xf32> to vector<4x256xf32>
    %165 = vector.broadcast %163 : vector<1x256xf32> to vector<4x256xf32>
    %166 = arith.mulf %164, %165 : vector<4x256xf32>
    %167 = arith.addf %155, %166 : vector<4x256xf32>
    %168 = vector.extract_strided_slice %161 {offsets = [0, 1], sizes = [4, 1], strides = [1, 1]} : vector<4x4xf32> to vector<4x1xf32>
    %169 = vector.extract_strided_slice %159 {offsets = [1, 0], sizes = [1, 256], strides = [1, 1]} : vector<4x256xf32> to vector<1x256xf32>
    %170 = vector.broadcast %168 : vector<4x1xf32> to vector<4x256xf32>
    %171 = vector.broadcast %169 : vector<1x256xf32> to vector<4x256xf32>
    %172 = arith.mulf %170, %171 : vector<4x256xf32>
    %173 = arith.addf %167, %172 : vector<4x256xf32>
    %174 = vector.extract_strided_slice %161 {offsets = [0, 2], sizes = [4, 1], strides = [1, 1]} : vector<4x4xf32> to vector<4x1xf32>
    %175 = vector.extract_strided_slice %159 {offsets = [2, 0], sizes = [1, 256], strides = [1, 1]} : vector<4x256xf32> to vector<1x256xf32>
    %176 = vector.broadcast %174 : vector<4x1xf32> to vector<4x256xf32>
    %177 = vector.broadcast %175 : vector<1x256xf32> to vector<4x256xf32>
    %178 = arith.mulf %176, %177 : vector<4x256xf32>
    %179 = arith.addf %173, %178 : vector<4x256xf32>
    %180 = vector.extract_strided_slice %161 {offsets = [0, 3], sizes = [4, 1], strides = [1, 1]} : vector<4x4xf32> to vector<4x1xf32>
    %181 = vector.extract_strided_slice %159 {offsets = [3, 0], sizes = [1, 256], strides = [1, 1]} : vector<4x256xf32> to vector<1x256xf32>
    %182 = vector.broadcast %180 : vector<4x1xf32> to vector<4x256xf32>
    %183 = vector.broadcast %181 : vector<1x256xf32> to vector<4x256xf32>
    %184 = arith.mulf %182, %183 : vector<4x256xf32>
    %185 = arith.addf %179, %184 : vector<4x256xf32>
    %c241_i32 = arith.constant 241 : i32
    %186 = tpu.dynamic_rotate %7 by %c241_i32 dim 1 : vector<4x256xf32>, i32 -> vector<4x256xf32>
    %187 = vector.extract_strided_slice %5 {offsets = [6, 0], sizes = [1, 256], strides = [1, 1]} : vector<9x256xf32> to vector<1x256xf32>
    %188 = vector.broadcast %187 : vector<1x256xf32> to vector<4x256xf32>
    %189 = arith.mulf %186, %188 : vector<4x256xf32>
    %190 = vector.extract_strided_slice %0 {offsets = [6, 0, 0], sizes = [1, 4, 4], strides = [1, 1, 1]} : vector<9x4x4xf32> to vector<1x4x4xf32>
    %191 = vector.shape_cast %190 : vector<1x4x4xf32> to vector<4x4xf32>
    %192 = vector.extract_strided_slice %191 {offsets = [0, 0], sizes = [4, 1], strides = [1, 1]} : vector<4x4xf32> to vector<4x1xf32>
    %193 = vector.extract_strided_slice %189 {offsets = [0, 0], sizes = [1, 256], strides = [1, 1]} : vector<4x256xf32> to vector<1x256xf32>
    %194 = vector.broadcast %192 : vector<4x1xf32> to vector<4x256xf32>
    %195 = vector.broadcast %193 : vector<1x256xf32> to vector<4x256xf32>
    %196 = arith.mulf %194, %195 : vector<4x256xf32>
    %197 = arith.addf %185, %196 : vector<4x256xf32>
    %198 = vector.extract_strided_slice %191 {offsets = [0, 1], sizes = [4, 1], strides = [1, 1]} : vector<4x4xf32> to vector<4x1xf32>
    %199 = vector.extract_strided_slice %189 {offsets = [1, 0], sizes = [1, 256], strides = [1, 1]} : vector<4x256xf32> to vector<1x256xf32>
    %200 = vector.broadcast %198 : vector<4x1xf32> to vector<4x256xf32>
    %201 = vector.broadcast %199 : vector<1x256xf32> to vector<4x256xf32>
    %202 = arith.mulf %200, %201 : vector<4x256xf32>
    %203 = arith.addf %197, %202 : vector<4x256xf32>
    %204 = vector.extract_strided_slice %191 {offsets = [0, 2], sizes = [4, 1], strides = [1, 1]} : vector<4x4xf32> to vector<4x1xf32>
    %205 = vector.extract_strided_slice %189 {offsets = [2, 0], sizes = [1, 256], strides = [1, 1]} : vector<4x256xf32> to vector<1x256xf32>
    %206 = vector.broadcast %204 : vector<4x1xf32> to vector<4x256xf32>
    %207 = vector.broadcast %205 : vector<1x256xf32> to vector<4x256xf32>
    %208 = arith.mulf %206, %207 : vector<4x256xf32>
    %209 = arith.addf %203, %208 : vector<4x256xf32>
    %210 = vector.extract_strided_slice %191 {offsets = [0, 3], sizes = [4, 1], strides = [1, 1]} : vector<4x4xf32> to vector<4x1xf32>
    %211 = vector.extract_strided_slice %189 {offsets = [3, 0], sizes = [1, 256], strides = [1, 1]} : vector<4x256xf32> to vector<1x256xf32>
    %212 = vector.broadcast %210 : vector<4x1xf32> to vector<4x256xf32>
    %213 = vector.broadcast %211 : vector<1x256xf32> to vector<4x256xf32>
    %214 = arith.mulf %212, %213 : vector<4x256xf32>
    %215 = arith.addf %209, %214 : vector<4x256xf32>
    %c240_i32 = arith.constant 240 : i32
    %216 = tpu.dynamic_rotate %7 by %c240_i32 dim 1 : vector<4x256xf32>, i32 -> vector<4x256xf32>
    %217 = vector.extract_strided_slice %5 {offsets = [7, 0], sizes = [1, 256], strides = [1, 1]} : vector<9x256xf32> to vector<1x256xf32>
    %218 = vector.broadcast %217 : vector<1x256xf32> to vector<4x256xf32>
    %219 = arith.mulf %216, %218 : vector<4x256xf32>
    %220 = vector.extract_strided_slice %0 {offsets = [7, 0, 0], sizes = [1, 4, 4], strides = [1, 1, 1]} : vector<9x4x4xf32> to vector<1x4x4xf32>
    %221 = vector.shape_cast %220 : vector<1x4x4xf32> to vector<4x4xf32>
    %222 = vector.extract_strided_slice %221 {offsets = [0, 0], sizes = [4, 1], strides = [1, 1]} : vector<4x4xf32> to vector<4x1xf32>
    %223 = vector.extract_strided_slice %219 {offsets = [0, 0], sizes = [1, 256], strides = [1, 1]} : vector<4x256xf32> to vector<1x256xf32>
    %224 = vector.broadcast %222 : vector<4x1xf32> to vector<4x256xf32>
    %225 = vector.broadcast %223 : vector<1x256xf32> to vector<4x256xf32>
    %226 = arith.mulf %224, %225 : vector<4x256xf32>
    %227 = arith.addf %215, %226 : vector<4x256xf32>
    %228 = vector.extract_strided_slice %221 {offsets = [0, 1], sizes = [4, 1], strides = [1, 1]} : vector<4x4xf32> to vector<4x1xf32>
    %229 = vector.extract_strided_slice %219 {offsets = [1, 0], sizes = [1, 256], strides = [1, 1]} : vector<4x256xf32> to vector<1x256xf32>
    %230 = vector.broadcast %228 : vector<4x1xf32> to vector<4x256xf32>
    %231 = vector.broadcast %229 : vector<1x256xf32> to vector<4x256xf32>
    %232 = arith.mulf %230, %231 : vector<4x256xf32>
    %233 = arith.addf %227, %232 : vector<4x256xf32>
    %234 = vector.extract_strided_slice %221 {offsets = [0, 2], sizes = [4, 1], strides = [1, 1]} : vector<4x4xf32> to vector<4x1xf32>
    %235 = vector.extract_strided_slice %219 {offsets = [2, 0], sizes = [1, 256], strides = [1, 1]} : vector<4x256xf32> to vector<1x256xf32>
    %236 = vector.broadcast %234 : vector<4x1xf32> to vector<4x256xf32>
    %237 = vector.broadcast %235 : vector<1x256xf32> to vector<4x256xf32>
    %238 = arith.mulf %236, %237 : vector<4x256xf32>
    %239 = arith.addf %233, %238 : vector<4x256xf32>
    %240 = vector.extract_strided_slice %221 {offsets = [0, 3], sizes = [4, 1], strides = [1, 1]} : vector<4x4xf32> to vector<4x1xf32>
    %241 = vector.extract_strided_slice %219 {offsets = [3, 0], sizes = [1, 256], strides = [1, 1]} : vector<4x256xf32> to vector<1x256xf32>
    %242 = vector.broadcast %240 : vector<4x1xf32> to vector<4x256xf32>
    %243 = vector.broadcast %241 : vector<1x256xf32> to vector<4x256xf32>
    %244 = arith.mulf %242, %243 : vector<4x256xf32>
    %245 = arith.addf %239, %244 : vector<4x256xf32>
    %c239_i32 = arith.constant 239 : i32
    %246 = tpu.dynamic_rotate %7 by %c239_i32 dim 1 : vector<4x256xf32>, i32 -> vector<4x256xf32>
    %247 = vector.extract_strided_slice %5 {offsets = [8, 0], sizes = [1, 256], strides = [1, 1]} : vector<9x256xf32> to vector<1x256xf32>
    %248 = vector.broadcast %247 : vector<1x256xf32> to vector<4x256xf32>
    %249 = arith.mulf %246, %248 : vector<4x256xf32>
    %250 = vector.extract_strided_slice %0 {offsets = [8, 0, 0], sizes = [1, 4, 4], strides = [1, 1, 1]} : vector<9x4x4xf32> to vector<1x4x4xf32>
    %251 = vector.shape_cast %250 : vector<1x4x4xf32> to vector<4x4xf32>
    %252 = vector.extract_strided_slice %251 {offsets = [0, 0], sizes = [4, 1], strides = [1, 1]} : vector<4x4xf32> to vector<4x1xf32>
    %253 = vector.extract_strided_slice %249 {offsets = [0, 0], sizes = [1, 256], strides = [1, 1]} : vector<4x256xf32> to vector<1x256xf32>
    %254 = vector.broadcast %252 : vector<4x1xf32> to vector<4x256xf32>
    %255 = vector.broadcast %253 : vector<1x256xf32> to vector<4x256xf32>
    %256 = arith.mulf %254, %255 : vector<4x256xf32>
    %257 = arith.addf %245, %256 : vector<4x256xf32>
    %258 = vector.extract_strided_slice %251 {offsets = [0, 1], sizes = [4, 1], strides = [1, 1]} : vector<4x4xf32> to vector<4x1xf32>
    %259 = vector.extract_strided_slice %249 {offsets = [1, 0], sizes = [1, 256], strides = [1, 1]} : vector<4x256xf32> to vector<1x256xf32>
    %260 = vector.broadcast %258 : vector<4x1xf32> to vector<4x256xf32>
    %261 = vector.broadcast %259 : vector<1x256xf32> to vector<4x256xf32>
    %262 = arith.mulf %260, %261 : vector<4x256xf32>
    %263 = arith.addf %257, %262 : vector<4x256xf32>
    %264 = vector.extract_strided_slice %251 {offsets = [0, 2], sizes = [4, 1], strides = [1, 1]} : vector<4x4xf32> to vector<4x1xf32>
    %265 = vector.extract_strided_slice %249 {offsets = [2, 0], sizes = [1, 256], strides = [1, 1]} : vector<4x256xf32> to vector<1x256xf32>
    %266 = vector.broadcast %264 : vector<4x1xf32> to vector<4x256xf32>
    %267 = vector.broadcast %265 : vector<1x256xf32> to vector<4x256xf32>
    %268 = arith.mulf %266, %267 : vector<4x256xf32>
    %269 = arith.addf %263, %268 : vector<4x256xf32>
    %270 = vector.extract_strided_slice %251 {offsets = [0, 3], sizes = [4, 1], strides = [1, 1]} : vector<4x4xf32> to vector<4x1xf32>
    %271 = vector.extract_strided_slice %249 {offsets = [3, 0], sizes = [1, 256], strides = [1, 1]} : vector<4x256xf32> to vector<1x256xf32>
    %272 = vector.broadcast %270 : vector<4x1xf32> to vector<4x256xf32>
    %273 = vector.broadcast %271 : vector<1x256xf32> to vector<4x256xf32>
    %274 = arith.mulf %272, %273 : vector<4x256xf32>
    %275 = arith.addf %269, %274 : vector<4x256xf32>
    %cst = arith.constant dense<0.000000e+00> : vector<4xf32>
    %276 = vector.multi_reduction <add>, %275, %cst [1] : vector<4x256xf32> to vector<4xf32>
    %277 = vector.shape_cast %276 : vector<4xf32> to vector<4x1xf32>
    %cst_9 = arith.constant 3.906250e-03 : f32
    %278 = vector.broadcast %cst_9 : f32 to vector<4x1xf32>
    %279 = arith.mulf %277, %278 : vector<4x1xf32>
    %280 = arith.mulf %275, %275 : vector<4x256xf32>
    %cst_10 = arith.constant dense<0.000000e+00> : vector<4xf32>
    %281 = vector.multi_reduction <add>, %280, %cst_10 [1] : vector<4x256xf32> to vector<4xf32>
    %282 = vector.shape_cast %281 : vector<4xf32> to vector<4x1xf32>
    %cst_11 = arith.constant 3.906250e-03 : f32
    %283 = vector.broadcast %cst_11 : f32 to vector<4x1xf32>
    %284 = arith.mulf %282, %283 : vector<4x1xf32>
    %285 = arith.mulf %279, %279 : vector<4x1xf32>
    %286 = arith.subf %284, %285 : vector<4x1xf32>
    %cst_12 = arith.constant 9.99999974E-6 : f32
    %287 = vector.broadcast %cst_12 : f32 to vector<4x1xf32>
    %288 = arith.addf %286, %287 : vector<4x1xf32>
    %289 = math.rsqrt %288 : vector<4x1xf32>
    %290 = arith.mulf %289, %3 : vector<4x1xf32>
    %291 = arith.mulf %279, %290 : vector<4x1xf32>
    %292 = arith.subf %4, %291 : vector<4x1xf32>
    %293 = vector.broadcast %290 : vector<4x1xf32> to vector<4x256xf32>
    %294 = arith.mulf %275, %293 : vector<4x256xf32>
    %295 = vector.broadcast %292 : vector<4x1xf32> to vector<4x256xf32>
    %296 = arith.addf %294, %295 : vector<4x256xf32>
    %cst_13 = arith.constant 0.000000e+00 : f32
    %297 = vector.broadcast %cst_13 : f32 to vector<4x256xf32>
    %298 = arith.cmpf oge, %296, %297 : vector<4x256xf32>
    %cst_14 = arith.constant 0.00999999977 : f32
    %299 = vector.broadcast %cst_14 : f32 to vector<4x256xf32>
    %300 = arith.mulf %299, %296 : vector<4x256xf32>
    %301 = arith.select %298, %296, %300 : vector<4x256xi1>, vector<4x256xf32>
    %302 = vector.shape_cast %2 : vector<4x1xf32> to vector<4x1xf32>
    %303 = vector.broadcast %302 : vector<4x1xf32> to vector<4x256xf32>
    %c17_i32_15 = arith.constant 17 : i32
    %304 = tpu.dynamic_rotate %301 by %c17_i32_15 dim 1 : vector<4x256xf32>, i32 -> vector<4x256xf32>
    %305 = vector.extract_strided_slice %5 {offsets = [0, 0], sizes = [1, 256], strides = [1, 1]} : vector<9x256xf32> to vector<1x256xf32>
    %306 = vector.broadcast %305 : vector<1x256xf32> to vector<4x256xf32>
    %307 = arith.mulf %304, %306 : vector<4x256xf32>
    %308 = vector.extract_strided_slice %0 {offsets = [0, 0, 0], sizes = [1, 4, 4], strides = [1, 1, 1]} : vector<9x4x4xf32> to vector<1x4x4xf32>
    %309 = vector.shape_cast %308 : vector<1x4x4xf32> to vector<4x4xf32>
    %310 = vector.extract_strided_slice %309 {offsets = [0, 0], sizes = [4, 1], strides = [1, 1]} : vector<4x4xf32> to vector<4x1xf32>
    %311 = vector.extract_strided_slice %307 {offsets = [0, 0], sizes = [1, 256], strides = [1, 1]} : vector<4x256xf32> to vector<1x256xf32>
    %312 = vector.broadcast %310 : vector<4x1xf32> to vector<4x256xf32>
    %313 = vector.broadcast %311 : vector<1x256xf32> to vector<4x256xf32>
    %314 = arith.mulf %312, %313 : vector<4x256xf32>
    %315 = arith.addf %303, %314 : vector<4x256xf32>
    %316 = vector.extract_strided_slice %309 {offsets = [0, 1], sizes = [4, 1], strides = [1, 1]} : vector<4x4xf32> to vector<4x1xf32>
    %317 = vector.extract_strided_slice %307 {offsets = [1, 0], sizes = [1, 256], strides = [1, 1]} : vector<4x256xf32> to vector<1x256xf32>
    %318 = vector.broadcast %316 : vector<4x1xf32> to vector<4x256xf32>
    %319 = vector.broadcast %317 : vector<1x256xf32> to vector<4x256xf32>
    %320 = arith.mulf %318, %319 : vector<4x256xf32>
    %321 = arith.addf %315, %320 : vector<4x256xf32>
    %322 = vector.extract_strided_slice %309 {offsets = [0, 2], sizes = [4, 1], strides = [1, 1]} : vector<4x4xf32> to vector<4x1xf32>
    %323 = vector.extract_strided_slice %307 {offsets = [2, 0], sizes = [1, 256], strides = [1, 1]} : vector<4x256xf32> to vector<1x256xf32>
    %324 = vector.broadcast %322 : vector<4x1xf32> to vector<4x256xf32>
    %325 = vector.broadcast %323 : vector<1x256xf32> to vector<4x256xf32>
    %326 = arith.mulf %324, %325 : vector<4x256xf32>
    %327 = arith.addf %321, %326 : vector<4x256xf32>
    %328 = vector.extract_strided_slice %309 {offsets = [0, 3], sizes = [4, 1], strides = [1, 1]} : vector<4x4xf32> to vector<4x1xf32>
    %329 = vector.extract_strided_slice %307 {offsets = [3, 0], sizes = [1, 256], strides = [1, 1]} : vector<4x256xf32> to vector<1x256xf32>
    %330 = vector.broadcast %328 : vector<4x1xf32> to vector<4x256xf32>
    %331 = vector.broadcast %329 : vector<1x256xf32> to vector<4x256xf32>
    %332 = arith.mulf %330, %331 : vector<4x256xf32>
    %333 = arith.addf %327, %332 : vector<4x256xf32>
    %c16_i32_16 = arith.constant 16 : i32
    %334 = tpu.dynamic_rotate %301 by %c16_i32_16 dim 1 : vector<4x256xf32>, i32 -> vector<4x256xf32>
    %335 = vector.extract_strided_slice %5 {offsets = [1, 0], sizes = [1, 256], strides = [1, 1]} : vector<9x256xf32> to vector<1x256xf32>
    %336 = vector.broadcast %335 : vector<1x256xf32> to vector<4x256xf32>
    %337 = arith.mulf %334, %336 : vector<4x256xf32>
    %338 = vector.extract_strided_slice %0 {offsets = [1, 0, 0], sizes = [1, 4, 4], strides = [1, 1, 1]} : vector<9x4x4xf32> to vector<1x4x4xf32>
    %339 = vector.shape_cast %338 : vector<1x4x4xf32> to vector<4x4xf32>
    %340 = vector.extract_strided_slice %339 {offsets = [0, 0], sizes = [4, 1], strides = [1, 1]} : vector<4x4xf32> to vector<4x1xf32>
    %341 = vector.extract_strided_slice %337 {offsets = [0, 0], sizes = [1, 256], strides = [1, 1]} : vector<4x256xf32> to vector<1x256xf32>
    %342 = vector.broadcast %340 : vector<4x1xf32> to vector<4x256xf32>
    %343 = vector.broadcast %341 : vector<1x256xf32> to vector<4x256xf32>
    %344 = arith.mulf %342, %343 : vector<4x256xf32>
    %345 = arith.addf %333, %344 : vector<4x256xf32>
    %346 = vector.extract_strided_slice %339 {offsets = [0, 1], sizes = [4, 1], strides = [1, 1]} : vector<4x4xf32> to vector<4x1xf32>
    %347 = vector.extract_strided_slice %337 {offsets = [1, 0], sizes = [1, 256], strides = [1, 1]} : vector<4x256xf32> to vector<1x256xf32>
    %348 = vector.broadcast %346 : vector<4x1xf32> to vector<4x256xf32>
    %349 = vector.broadcast %347 : vector<1x256xf32> to vector<4x256xf32>
    %350 = arith.mulf %348, %349 : vector<4x256xf32>
    %351 = arith.addf %345, %350 : vector<4x256xf32>
    %352 = vector.extract_strided_slice %339 {offsets = [0, 2], sizes = [4, 1], strides = [1, 1]} : vector<4x4xf32> to vector<4x1xf32>
    %353 = vector.extract_strided_slice %337 {offsets = [2, 0], sizes = [1, 256], strides = [1, 1]} : vector<4x256xf32> to vector<1x256xf32>
    %354 = vector.broadcast %352 : vector<4x1xf32> to vector<4x256xf32>
    %355 = vector.broadcast %353 : vector<1x256xf32> to vector<4x256xf32>
    %356 = arith.mulf %354, %355 : vector<4x256xf32>
    %357 = arith.addf %351, %356 : vector<4x256xf32>
    %358 = vector.extract_strided_slice %339 {offsets = [0, 3], sizes = [4, 1], strides = [1, 1]} : vector<4x4xf32> to vector<4x1xf32>
    %359 = vector.extract_strided_slice %337 {offsets = [3, 0], sizes = [1, 256], strides = [1, 1]} : vector<4x256xf32> to vector<1x256xf32>
    %360 = vector.broadcast %358 : vector<4x1xf32> to vector<4x256xf32>
    %361 = vector.broadcast %359 : vector<1x256xf32> to vector<4x256xf32>
    %362 = arith.mulf %360, %361 : vector<4x256xf32>
    %363 = arith.addf %357, %362 : vector<4x256xf32>
    %c15_i32_17 = arith.constant 15 : i32
    %364 = tpu.dynamic_rotate %301 by %c15_i32_17 dim 1 : vector<4x256xf32>, i32 -> vector<4x256xf32>
    %365 = vector.extract_strided_slice %5 {offsets = [2, 0], sizes = [1, 256], strides = [1, 1]} : vector<9x256xf32> to vector<1x256xf32>
    %366 = vector.broadcast %365 : vector<1x256xf32> to vector<4x256xf32>
    %367 = arith.mulf %364, %366 : vector<4x256xf32>
    %368 = vector.extract_strided_slice %0 {offsets = [2, 0, 0], sizes = [1, 4, 4], strides = [1, 1, 1]} : vector<9x4x4xf32> to vector<1x4x4xf32>
    %369 = vector.shape_cast %368 : vector<1x4x4xf32> to vector<4x4xf32>
    %370 = vector.extract_strided_slice %369 {offsets = [0, 0], sizes = [4, 1], strides = [1, 1]} : vector<4x4xf32> to vector<4x1xf32>
    %371 = vector.extract_strided_slice %367 {offsets = [0, 0], sizes = [1, 256], strides = [1, 1]} : vector<4x256xf32> to vector<1x256xf32>
    %372 = vector.broadcast %370 : vector<4x1xf32> to vector<4x256xf32>
    %373 = vector.broadcast %371 : vector<1x256xf32> to vector<4x256xf32>
    %374 = arith.mulf %372, %373 : vector<4x256xf32>
    %375 = arith.addf %363, %374 : vector<4x256xf32>
    %376 = vector.extract_strided_slice %369 {offsets = [0, 1], sizes = [4, 1], strides = [1, 1]} : vector<4x4xf32> to vector<4x1xf32>
    %377 = vector.extract_strided_slice %367 {offsets = [1, 0], sizes = [1, 256], strides = [1, 1]} : vector<4x256xf32> to vector<1x256xf32>
    %378 = vector.broadcast %376 : vector<4x1xf32> to vector<4x256xf32>
    %379 = vector.broadcast %377 : vector<1x256xf32> to vector<4x256xf32>
    %380 = arith.mulf %378, %379 : vector<4x256xf32>
    %381 = arith.addf %375, %380 : vector<4x256xf32>
    %382 = vector.extract_strided_slice %369 {offsets = [0, 2], sizes = [4, 1], strides = [1, 1]} : vector<4x4xf32> to vector<4x1xf32>
    %383 = vector.extract_strided_slice %367 {offsets = [2, 0], sizes = [1, 256], strides = [1, 1]} : vector<4x256xf32> to vector<1x256xf32>
    %384 = vector.broadcast %382 : vector<4x1xf32> to vector<4x256xf32>
    %385 = vector.broadcast %383 : vector<1x256xf32> to vector<4x256xf32>
    %386 = arith.mulf %384, %385 : vector<4x256xf32>
    %387 = arith.addf %381, %386 : vector<4x256xf32>
    %388 = vector.extract_strided_slice %369 {offsets = [0, 3], sizes = [4, 1], strides = [1, 1]} : vector<4x4xf32> to vector<4x1xf32>
    %389 = vector.extract_strided_slice %367 {offsets = [3, 0], sizes = [1, 256], strides = [1, 1]} : vector<4x256xf32> to vector<1x256xf32>
    %390 = vector.broadcast %388 : vector<4x1xf32> to vector<4x256xf32>
    %391 = vector.broadcast %389 : vector<1x256xf32> to vector<4x256xf32>
    %392 = arith.mulf %390, %391 : vector<4x256xf32>
    %393 = arith.addf %387, %392 : vector<4x256xf32>
    %c1_i32_18 = arith.constant 1 : i32
    %394 = tpu.dynamic_rotate %301 by %c1_i32_18 dim 1 : vector<4x256xf32>, i32 -> vector<4x256xf32>
    %395 = vector.extract_strided_slice %5 {offsets = [3, 0], sizes = [1, 256], strides = [1, 1]} : vector<9x256xf32> to vector<1x256xf32>
    %396 = vector.broadcast %395 : vector<1x256xf32> to vector<4x256xf32>
    %397 = arith.mulf %394, %396 : vector<4x256xf32>
    %398 = vector.extract_strided_slice %0 {offsets = [3, 0, 0], sizes = [1, 4, 4], strides = [1, 1, 1]} : vector<9x4x4xf32> to vector<1x4x4xf32>
    %399 = vector.shape_cast %398 : vector<1x4x4xf32> to vector<4x4xf32>
    %400 = vector.extract_strided_slice %399 {offsets = [0, 0], sizes = [4, 1], strides = [1, 1]} : vector<4x4xf32> to vector<4x1xf32>
    %401 = vector.extract_strided_slice %397 {offsets = [0, 0], sizes = [1, 256], strides = [1, 1]} : vector<4x256xf32> to vector<1x256xf32>
    %402 = vector.broadcast %400 : vector<4x1xf32> to vector<4x256xf32>
    %403 = vector.broadcast %401 : vector<1x256xf32> to vector<4x256xf32>
    %404 = arith.mulf %402, %403 : vector<4x256xf32>
    %405 = arith.addf %393, %404 : vector<4x256xf32>
    %406 = vector.extract_strided_slice %399 {offsets = [0, 1], sizes = [4, 1], strides = [1, 1]} : vector<4x4xf32> to vector<4x1xf32>
    %407 = vector.extract_strided_slice %397 {offsets = [1, 0], sizes = [1, 256], strides = [1, 1]} : vector<4x256xf32> to vector<1x256xf32>
    %408 = vector.broadcast %406 : vector<4x1xf32> to vector<4x256xf32>
    %409 = vector.broadcast %407 : vector<1x256xf32> to vector<4x256xf32>
    %410 = arith.mulf %408, %409 : vector<4x256xf32>
    %411 = arith.addf %405, %410 : vector<4x256xf32>
    %412 = vector.extract_strided_slice %399 {offsets = [0, 2], sizes = [4, 1], strides = [1, 1]} : vector<4x4xf32> to vector<4x1xf32>
    %413 = vector.extract_strided_slice %397 {offsets = [2, 0], sizes = [1, 256], strides = [1, 1]} : vector<4x256xf32> to vector<1x256xf32>
    %414 = vector.broadcast %412 : vector<4x1xf32> to vector<4x256xf32>
    %415 = vector.broadcast %413 : vector<1x256xf32> to vector<4x256xf32>
    %416 = arith.mulf %414, %415 : vector<4x256xf32>
    %417 = arith.addf %411, %416 : vector<4x256xf32>
    %418 = vector.extract_strided_slice %399 {offsets = [0, 3], sizes = [4, 1], strides = [1, 1]} : vector<4x4xf32> to vector<4x1xf32>
    %419 = vector.extract_strided_slice %397 {offsets = [3, 0], sizes = [1, 256], strides = [1, 1]} : vector<4x256xf32> to vector<1x256xf32>
    %420 = vector.broadcast %418 : vector<4x1xf32> to vector<4x256xf32>
    %421 = vector.broadcast %419 : vector<1x256xf32> to vector<4x256xf32>
    %422 = arith.mulf %420, %421 : vector<4x256xf32>
    %423 = arith.addf %417, %422 : vector<4x256xf32>
    %424 = vector.extract_strided_slice %0 {offsets = [4, 0, 0], sizes = [1, 4, 4], strides = [1, 1, 1]} : vector<9x4x4xf32> to vector<1x4x4xf32>
    %425 = vector.shape_cast %424 : vector<1x4x4xf32> to vector<4x4xf32>
    %426 = vector.extract_strided_slice %425 {offsets = [0, 0], sizes = [4, 1], strides = [1, 1]} : vector<4x4xf32> to vector<4x1xf32>
    %427 = vector.extract_strided_slice %301 {offsets = [0, 0], sizes = [1, 256], strides = [1, 1]} : vector<4x256xf32> to vector<1x256xf32>
    %428 = vector.broadcast %426 : vector<4x1xf32> to vector<4x256xf32>
    %429 = vector.broadcast %427 : vector<1x256xf32> to vector<4x256xf32>
    %430 = arith.mulf %428, %429 : vector<4x256xf32>
    %431 = arith.addf %423, %430 : vector<4x256xf32>
    %432 = vector.extract_strided_slice %425 {offsets = [0, 1], sizes = [4, 1], strides = [1, 1]} : vector<4x4xf32> to vector<4x1xf32>
    %433 = vector.extract_strided_slice %301 {offsets = [1, 0], sizes = [1, 256], strides = [1, 1]} : vector<4x256xf32> to vector<1x256xf32>
    %434 = vector.broadcast %432 : vector<4x1xf32> to vector<4x256xf32>
    %435 = vector.broadcast %433 : vector<1x256xf32> to vector<4x256xf32>
    %436 = arith.mulf %434, %435 : vector<4x256xf32>
    %437 = arith.addf %431, %436 : vector<4x256xf32>
    %438 = vector.extract_strided_slice %425 {offsets = [0, 2], sizes = [4, 1], strides = [1, 1]} : vector<4x4xf32> to vector<4x1xf32>
    %439 = vector.extract_strided_slice %301 {offsets = [2, 0], sizes = [1, 256], strides = [1, 1]} : vector<4x256xf32> to vector<1x256xf32>
    %440 = vector.broadcast %438 : vector<4x1xf32> to vector<4x256xf32>
    %441 = vector.broadcast %439 : vector<1x256xf32> to vector<4x256xf32>
    %442 = arith.mulf %440, %441 : vector<4x256xf32>
    %443 = arith.addf %437, %442 : vector<4x256xf32>
    %444 = vector.extract_strided_slice %425 {offsets = [0, 3], sizes = [4, 1], strides = [1, 1]} : vector<4x4xf32> to vector<4x1xf32>
    %445 = vector.extract_strided_slice %301 {offsets = [3, 0], sizes = [1, 256], strides = [1, 1]} : vector<4x256xf32> to vector<1x256xf32>
    %446 = vector.broadcast %444 : vector<4x1xf32> to vector<4x256xf32>
    %447 = vector.broadcast %445 : vector<1x256xf32> to vector<4x256xf32>
    %448 = arith.mulf %446, %447 : vector<4x256xf32>
    %449 = arith.addf %443, %448 : vector<4x256xf32>
    %c255_i32_19 = arith.constant 255 : i32
    %450 = tpu.dynamic_rotate %301 by %c255_i32_19 dim 1 : vector<4x256xf32>, i32 -> vector<4x256xf32>
    %451 = vector.extract_strided_slice %5 {offsets = [5, 0], sizes = [1, 256], strides = [1, 1]} : vector<9x256xf32> to vector<1x256xf32>
    %452 = vector.broadcast %451 : vector<1x256xf32> to vector<4x256xf32>
    %453 = arith.mulf %450, %452 : vector<4x256xf32>
    %454 = vector.extract_strided_slice %0 {offsets = [5, 0, 0], sizes = [1, 4, 4], strides = [1, 1, 1]} : vector<9x4x4xf32> to vector<1x4x4xf32>
    %455 = vector.shape_cast %454 : vector<1x4x4xf32> to vector<4x4xf32>
    %456 = vector.extract_strided_slice %455 {offsets = [0, 0], sizes = [4, 1], strides = [1, 1]} : vector<4x4xf32> to vector<4x1xf32>
    %457 = vector.extract_strided_slice %453 {offsets = [0, 0], sizes = [1, 256], strides = [1, 1]} : vector<4x256xf32> to vector<1x256xf32>
    %458 = vector.broadcast %456 : vector<4x1xf32> to vector<4x256xf32>
    %459 = vector.broadcast %457 : vector<1x256xf32> to vector<4x256xf32>
    %460 = arith.mulf %458, %459 : vector<4x256xf32>
    %461 = arith.addf %449, %460 : vector<4x256xf32>
    %462 = vector.extract_strided_slice %455 {offsets = [0, 1], sizes = [4, 1], strides = [1, 1]} : vector<4x4xf32> to vector<4x1xf32>
    %463 = vector.extract_strided_slice %453 {offsets = [1, 0], sizes = [1, 256], strides = [1, 1]} : vector<4x256xf32> to vector<1x256xf32>
    %464 = vector.broadcast %462 : vector<4x1xf32> to vector<4x256xf32>
    %465 = vector.broadcast %463 : vector<1x256xf32> to vector<4x256xf32>
    %466 = arith.mulf %464, %465 : vector<4x256xf32>
    %467 = arith.addf %461, %466 : vector<4x256xf32>
    %468 = vector.extract_strided_slice %455 {offsets = [0, 2], sizes = [4, 1], strides = [1, 1]} : vector<4x4xf32> to vector<4x1xf32>
    %469 = vector.extract_strided_slice %453 {offsets = [2, 0], sizes = [1, 256], strides = [1, 1]} : vector<4x256xf32> to vector<1x256xf32>
    %470 = vector.broadcast %468 : vector<4x1xf32> to vector<4x256xf32>
    %471 = vector.broadcast %469 : vector<1x256xf32> to vector<4x256xf32>
    %472 = arith.mulf %470, %471 : vector<4x256xf32>
    %473 = arith.addf %467, %472 : vector<4x256xf32>
    %474 = vector.extract_strided_slice %455 {offsets = [0, 3], sizes = [4, 1], strides = [1, 1]} : vector<4x4xf32> to vector<4x1xf32>
    %475 = vector.extract_strided_slice %453 {offsets = [3, 0], sizes = [1, 256], strides = [1, 1]} : vector<4x256xf32> to vector<1x256xf32>
    %476 = vector.broadcast %474 : vector<4x1xf32> to vector<4x256xf32>
    %477 = vector.broadcast %475 : vector<1x256xf32> to vector<4x256xf32>
    %478 = arith.mulf %476, %477 : vector<4x256xf32>
    %479 = arith.addf %473, %478 : vector<4x256xf32>
    %c241_i32_20 = arith.constant 241 : i32
    %480 = tpu.dynamic_rotate %301 by %c241_i32_20 dim 1 : vector<4x256xf32>, i32 -> vector<4x256xf32>
    %481 = vector.extract_strided_slice %5 {offsets = [6, 0], sizes = [1, 256], strides = [1, 1]} : vector<9x256xf32> to vector<1x256xf32>
    %482 = vector.broadcast %481 : vector<1x256xf32> to vector<4x256xf32>
    %483 = arith.mulf %480, %482 : vector<4x256xf32>
    %484 = vector.extract_strided_slice %0 {offsets = [6, 0, 0], sizes = [1, 4, 4], strides = [1, 1, 1]} : vector<9x4x4xf32> to vector<1x4x4xf32>
    %485 = vector.shape_cast %484 : vector<1x4x4xf32> to vector<4x4xf32>
    %486 = vector.extract_strided_slice %485 {offsets = [0, 0], sizes = [4, 1], strides = [1, 1]} : vector<4x4xf32> to vector<4x1xf32>
    %487 = vector.extract_strided_slice %483 {offsets = [0, 0], sizes = [1, 256], strides = [1, 1]} : vector<4x256xf32> to vector<1x256xf32>
    %488 = vector.broadcast %486 : vector<4x1xf32> to vector<4x256xf32>
    %489 = vector.broadcast %487 : vector<1x256xf32> to vector<4x256xf32>
    %490 = arith.mulf %488, %489 : vector<4x256xf32>
    %491 = arith.addf %479, %490 : vector<4x256xf32>
    %492 = vector.extract_strided_slice %485 {offsets = [0, 1], sizes = [4, 1], strides = [1, 1]} : vector<4x4xf32> to vector<4x1xf32>
    %493 = vector.extract_strided_slice %483 {offsets = [1, 0], sizes = [1, 256], strides = [1, 1]} : vector<4x256xf32> to vector<1x256xf32>
    %494 = vector.broadcast %492 : vector<4x1xf32> to vector<4x256xf32>
    %495 = vector.broadcast %493 : vector<1x256xf32> to vector<4x256xf32>
    %496 = arith.mulf %494, %495 : vector<4x256xf32>
    %497 = arith.addf %491, %496 : vector<4x256xf32>
    %498 = vector.extract_strided_slice %485 {offsets = [0, 2], sizes = [4, 1], strides = [1, 1]} : vector<4x4xf32> to vector<4x1xf32>
    %499 = vector.extract_strided_slice %483 {offsets = [2, 0], sizes = [1, 256], strides = [1, 1]} : vector<4x256xf32> to vector<1x256xf32>
    %500 = vector.broadcast %498 : vector<4x1xf32> to vector<4x256xf32>
    %501 = vector.broadcast %499 : vector<1x256xf32> to vector<4x256xf32>
    %502 = arith.mulf %500, %501 : vector<4x256xf32>
    %503 = arith.addf %497, %502 : vector<4x256xf32>
    %504 = vector.extract_strided_slice %485 {offsets = [0, 3], sizes = [4, 1], strides = [1, 1]} : vector<4x4xf32> to vector<4x1xf32>
    %505 = vector.extract_strided_slice %483 {offsets = [3, 0], sizes = [1, 256], strides = [1, 1]} : vector<4x256xf32> to vector<1x256xf32>
    %506 = vector.broadcast %504 : vector<4x1xf32> to vector<4x256xf32>
    %507 = vector.broadcast %505 : vector<1x256xf32> to vector<4x256xf32>
    %508 = arith.mulf %506, %507 : vector<4x256xf32>
    %509 = arith.addf %503, %508 : vector<4x256xf32>
    %c240_i32_21 = arith.constant 240 : i32
    %510 = tpu.dynamic_rotate %301 by %c240_i32_21 dim 1 : vector<4x256xf32>, i32 -> vector<4x256xf32>
    %511 = vector.extract_strided_slice %5 {offsets = [7, 0], sizes = [1, 256], strides = [1, 1]} : vector<9x256xf32> to vector<1x256xf32>
    %512 = vector.broadcast %511 : vector<1x256xf32> to vector<4x256xf32>
    %513 = arith.mulf %510, %512 : vector<4x256xf32>
    %514 = vector.extract_strided_slice %0 {offsets = [7, 0, 0], sizes = [1, 4, 4], strides = [1, 1, 1]} : vector<9x4x4xf32> to vector<1x4x4xf32>
    %515 = vector.shape_cast %514 : vector<1x4x4xf32> to vector<4x4xf32>
    %516 = vector.extract_strided_slice %515 {offsets = [0, 0], sizes = [4, 1], strides = [1, 1]} : vector<4x4xf32> to vector<4x1xf32>
    %517 = vector.extract_strided_slice %513 {offsets = [0, 0], sizes = [1, 256], strides = [1, 1]} : vector<4x256xf32> to vector<1x256xf32>
    %518 = vector.broadcast %516 : vector<4x1xf32> to vector<4x256xf32>
    %519 = vector.broadcast %517 : vector<1x256xf32> to vector<4x256xf32>
    %520 = arith.mulf %518, %519 : vector<4x256xf32>
    %521 = arith.addf %509, %520 : vector<4x256xf32>
    %522 = vector.extract_strided_slice %515 {offsets = [0, 1], sizes = [4, 1], strides = [1, 1]} : vector<4x4xf32> to vector<4x1xf32>
    %523 = vector.extract_strided_slice %513 {offsets = [1, 0], sizes = [1, 256], strides = [1, 1]} : vector<4x256xf32> to vector<1x256xf32>
    %524 = vector.broadcast %522 : vector<4x1xf32> to vector<4x256xf32>
    %525 = vector.broadcast %523 : vector<1x256xf32> to vector<4x256xf32>
    %526 = arith.mulf %524, %525 : vector<4x256xf32>
    %527 = arith.addf %521, %526 : vector<4x256xf32>
    %528 = vector.extract_strided_slice %515 {offsets = [0, 2], sizes = [4, 1], strides = [1, 1]} : vector<4x4xf32> to vector<4x1xf32>
    %529 = vector.extract_strided_slice %513 {offsets = [2, 0], sizes = [1, 256], strides = [1, 1]} : vector<4x256xf32> to vector<1x256xf32>
    %530 = vector.broadcast %528 : vector<4x1xf32> to vector<4x256xf32>
    %531 = vector.broadcast %529 : vector<1x256xf32> to vector<4x256xf32>
    %532 = arith.mulf %530, %531 : vector<4x256xf32>
    %533 = arith.addf %527, %532 : vector<4x256xf32>
    %534 = vector.extract_strided_slice %515 {offsets = [0, 3], sizes = [4, 1], strides = [1, 1]} : vector<4x4xf32> to vector<4x1xf32>
    %535 = vector.extract_strided_slice %513 {offsets = [3, 0], sizes = [1, 256], strides = [1, 1]} : vector<4x256xf32> to vector<1x256xf32>
    %536 = vector.broadcast %534 : vector<4x1xf32> to vector<4x256xf32>
    %537 = vector.broadcast %535 : vector<1x256xf32> to vector<4x256xf32>
    %538 = arith.mulf %536, %537 : vector<4x256xf32>
    %539 = arith.addf %533, %538 : vector<4x256xf32>
    %c239_i32_22 = arith.constant 239 : i32
    %540 = tpu.dynamic_rotate %301 by %c239_i32_22 dim 1 : vector<4x256xf32>, i32 -> vector<4x256xf32>
    %541 = vector.extract_strided_slice %5 {offsets = [8, 0], sizes = [1, 256], strides = [1, 1]} : vector<9x256xf32> to vector<1x256xf32>
    %542 = vector.broadcast %541 : vector<1x256xf32> to vector<4x256xf32>
    %543 = arith.mulf %540, %542 : vector<4x256xf32>
    %544 = vector.extract_strided_slice %0 {offsets = [8, 0, 0], sizes = [1, 4, 4], strides = [1, 1, 1]} : vector<9x4x4xf32> to vector<1x4x4xf32>
    %545 = vector.shape_cast %544 : vector<1x4x4xf32> to vector<4x4xf32>
    %546 = vector.extract_strided_slice %545 {offsets = [0, 0], sizes = [4, 1], strides = [1, 1]} : vector<4x4xf32> to vector<4x1xf32>
    %547 = vector.extract_strided_slice %543 {offsets = [0, 0], sizes = [1, 256], strides = [1, 1]} : vector<4x256xf32> to vector<1x256xf32>
    %548 = vector.broadcast %546 : vector<4x1xf32> to vector<4x256xf32>
    %549 = vector.broadcast %547 : vector<1x256xf32> to vector<4x256xf32>
    %550 = arith.mulf %548, %549 : vector<4x256xf32>
    %551 = arith.addf %539, %550 : vector<4x256xf32>
    %552 = vector.extract_strided_slice %545 {offsets = [0, 1], sizes = [4, 1], strides = [1, 1]} : vector<4x4xf32> to vector<4x1xf32>
    %553 = vector.extract_strided_slice %543 {offsets = [1, 0], sizes = [1, 256], strides = [1, 1]} : vector<4x256xf32> to vector<1x256xf32>
    %554 = vector.broadcast %552 : vector<4x1xf32> to vector<4x256xf32>
    %555 = vector.broadcast %553 : vector<1x256xf32> to vector<4x256xf32>
    %556 = arith.mulf %554, %555 : vector<4x256xf32>
    %557 = arith.addf %551, %556 : vector<4x256xf32>
    %558 = vector.extract_strided_slice %545 {offsets = [0, 2], sizes = [4, 1], strides = [1, 1]} : vector<4x4xf32> to vector<4x1xf32>
    %559 = vector.extract_strided_slice %543 {offsets = [2, 0], sizes = [1, 256], strides = [1, 1]} : vector<4x256xf32> to vector<1x256xf32>
    %560 = vector.broadcast %558 : vector<4x1xf32> to vector<4x256xf32>
    %561 = vector.broadcast %559 : vector<1x256xf32> to vector<4x256xf32>
    %562 = arith.mulf %560, %561 : vector<4x256xf32>
    %563 = arith.addf %557, %562 : vector<4x256xf32>
    %564 = vector.extract_strided_slice %545 {offsets = [0, 3], sizes = [4, 1], strides = [1, 1]} : vector<4x4xf32> to vector<4x1xf32>
    %565 = vector.extract_strided_slice %543 {offsets = [3, 0], sizes = [1, 256], strides = [1, 1]} : vector<4x256xf32> to vector<1x256xf32>
    %566 = vector.broadcast %564 : vector<4x1xf32> to vector<4x256xf32>
    %567 = vector.broadcast %565 : vector<1x256xf32> to vector<4x256xf32>
    %568 = arith.mulf %566, %567 : vector<4x256xf32>
    %569 = arith.addf %563, %568 : vector<4x256xf32>
    %cst_23 = arith.constant dense<0.000000e+00> : vector<4xf32>
    %570 = vector.multi_reduction <add>, %569, %cst_23 [1] : vector<4x256xf32> to vector<4xf32>
    %571 = vector.shape_cast %570 : vector<4xf32> to vector<4x1xf32>
    %cst_24 = arith.constant 3.906250e-03 : f32
    %572 = vector.broadcast %cst_24 : f32 to vector<4x1xf32>
    %573 = arith.mulf %571, %572 : vector<4x1xf32>
    %574 = arith.mulf %569, %569 : vector<4x256xf32>
    %cst_25 = arith.constant dense<0.000000e+00> : vector<4xf32>
    %575 = vector.multi_reduction <add>, %574, %cst_25 [1] : vector<4x256xf32> to vector<4xf32>
    %576 = vector.shape_cast %575 : vector<4xf32> to vector<4x1xf32>
    %cst_26 = arith.constant 3.906250e-03 : f32
    %577 = vector.broadcast %cst_26 : f32 to vector<4x1xf32>
    %578 = arith.mulf %576, %577 : vector<4x1xf32>
    %579 = arith.mulf %573, %573 : vector<4x1xf32>
    %580 = arith.subf %578, %579 : vector<4x1xf32>
    %cst_27 = arith.constant 9.99999974E-6 : f32
    %581 = vector.broadcast %cst_27 : f32 to vector<4x1xf32>
    %582 = arith.addf %580, %581 : vector<4x1xf32>
    %583 = math.rsqrt %582 : vector<4x1xf32>
    %584 = arith.mulf %583, %3 : vector<4x1xf32>
    %585 = arith.mulf %573, %584 : vector<4x1xf32>
    %586 = arith.subf %4, %585 : vector<4x1xf32>
    %587 = vector.broadcast %584 : vector<4x1xf32> to vector<4x256xf32>
    %588 = arith.mulf %569, %587 : vector<4x256xf32>
    %589 = vector.broadcast %586 : vector<4x1xf32> to vector<4x256xf32>
    %590 = arith.addf %588, %589 : vector<4x256xf32>
    %c0_28 = arith.constant 0 : index
    %c0_29 = arith.constant 0 : index
    %c0_30 = arith.constant 0 : index
    %591 = vector.load %arg1[%c0_28, %c0_29, %c0_30] : memref<1x4x256xf32, #tpu.memory_space<vmem>>, vector<1x4x256xf32>
    %592 = vector.shape_cast %591 : vector<1x4x256xf32> to vector<4x256xf32>
    %593 = arith.addf %590, %592 : vector<4x256xf32>
    %cst_31 = arith.constant 0.000000e+00 : f32
    %594 = vector.broadcast %cst_31 : f32 to vector<4x256xf32>
    %595 = arith.cmpf oge, %593, %594 : vector<4x256xf32>
    %cst_32 = arith.constant 0.00999999977 : f32
    %596 = vector.broadcast %cst_32 : f32 to vector<4x256xf32>
    %597 = arith.mulf %596, %593 : vector<4x256xf32>
    %598 = arith.select %595, %593, %597 : vector<4x256xi1>, vector<4x256xf32>
    %c0_33 = arith.constant 0 : index
    %c0_34 = arith.constant 0 : index
    %c0_35 = arith.constant 0 : index
    %599 = vector.load %arg5[%c0_33, %c0_34, %c0_35] : memref<1x4x256xf32, #tpu.memory_space<vmem>>, vector<1x4x256xf32>
    %600 = vector.shape_cast %599 : vector<1x4x256xf32> to vector<4x256xf32>
    %601 = vector.shape_cast %598 : vector<4x256xf32> to vector<1x4x256xf32>
    tpu.vector_store %arg5[%c0_33, %c0_34, %c0_35], %601 {strides = array<i32>} : memref<1x4x256xf32, #tpu.memory_space<vmem>>, vector<1x4x256xf32>,
    return
  }
  func.func @transform_0(%arg0: i32) -> (i32, i32, i32) {
    %c0_i32 = arith.constant 0 : i32
    %c0_i32_0 = arith.constant 0 : i32
    %c0_i32_1 = arith.constant 0 : i32
    return %arg0, %c0_i32, %c0_i32_0 : i32, i32, i32
  }
  func.func @transform_1(%arg0: i32) -> (i32, i32, i32) {
    %c0_i32 = arith.constant 0 : i32
    %c0_i32_0 = arith.constant 0 : i32
    %c0_i32_1 = arith.constant 0 : i32
    %c0_i32_2 = arith.constant 0 : i32
    return %c0_i32, %c0_i32_0, %c0_i32_1 : i32, i32, i32
  }
  func.func @transform_2(%arg0: i32) -> (i32, i32) {
    %c0_i32 = arith.constant 0 : i32
    %c0_i32_0 = arith.constant 0 : i32
    %c0_i32_1 = arith.constant 0 : i32
    return %c0_i32, %c0_i32_0 : i32, i32
  }
  func.func @transform_3(%arg0: i32) -> (i32, i32) {
    %c0_i32 = arith.constant 0 : i32
    %c0_i32_0 = arith.constant 0 : i32
    %c0_i32_1 = arith.constant 0 : i32
    return %c0_i32, %c0_i32_0 : i32, i32
  }
  func.func @transform_4(%arg0: i32) -> (i32, i32, i32) {
    %c0_i32 = arith.constant 0 : i32
    %c0_i32_0 = arith.constant 0 : i32
    %c0_i32_1 = arith.constant 0 : i32
    return %arg0, %c0_i32, %c0_i32_0 : i32, i32, i32
  }
}

</mosaic_0001>

<bundles_post_ra>
// kernel: tpu_custom_call.1
= control target key start
LH: loop header
LB: loop body
LE: loop exit
PB: predicated region body
PF: predicated region fallthrough
CT: control target
= control target key end

     0   :  { %9 = vsyncpa [#allocation3], 0  ;;  %s2697_s0 = inlined_call_operand.vmem [shape: f32[2,4,256], index: 0, kind: input, shape index: {}]   ;;  %s2698_s1 = inlined_call_operand.vmem [shape: f32[9,4,4], index: 1, kind: input, shape index: {}]   ;;  %s2699_s2 = inlined_call_operand.vmem [shape: f32[4,3], index: 2, kind: input, shape index: {}]   ;;  %s2700_s3 = inlined_call_operand.vmem [shape: f32[9,256], index: 3, kind: input, shape index: {}]   ;;  %s2701_s4 = inlined_call_operand.hbm [shape: f32[2,4,256], index: 4, kind: output, shape index: {}]  }
   0x1   :  { %11 = vsyncpa [#allocation3 + $0x1], 0  ;;  %s1855_s15 = smov 0   ;;  %s1857_s16 = smov 0  }
   0x2   :  { %s1859_s17 = smov 0   ;;  %s1861_s18 = smov 0  }
   0x3 LB: > { %s1876_s19 = sadd.s32 4294967295, %s1815_s18   ;;  %s1650_s20 = sadd.s32 4294967294, %s1815_s18   ;;  %s1815_s18 = sphi %s1861_s18, %s2775_s18   ;;  %s1811_s17 = sphi %s1859_s17, %s2774_s17   ;;  %s1807_s16 = sphi %s1857_s16, %s2773_s16   ;;  %s1803_s15 = sphi %s1855_s15, %s2772_s15  }
   0x4   : > { %s1880_s21 = sadd.s32 1, %s1815_s18   ;;  %s113_s22 = sadd.s32 1, %s1811_s17 }
   0x5   : > { %s110_s23 = ssub.s32 %s1815_s18, %s1880_s21  ;;  %p123_p0 = scmp.ne.s32.totalorder %s1811_s17, %s1807_s16 }
   0x6   : > { %p111_p1 = scmp.eq.s32.totalorder %s110_s23, 0  ;;  %p124_p2 = scmp.eq.s32.totalorder %s1876_s19, 1 }
   0x7   : > { %p129_p3 = scmp.ne.s32.totalorder %s1807_s16, %s1803_s15  ;;  %p130_p4 = scmp.eq.s32.totalorder %s1650_s20, 1 }
   0x8   : > { %s1891_s24 = scalar_select %p111_p1, %s1811_s17, %s113_s22  }
   0x9   : > { %p1893_p5 = por %p124_p2, %p123_p0  ;;  %p1897_p6 = por %p130_p4, %p129_p3 }
   0xa   : > { %p1653_p7 = scmp.ge.s32.totalorder %s1815_s18, 1  ;;  %p165_p8 = scmp.lt.s32.totalorder %s1815_s18, 3 }
   0xc   : > { %p166_p9 = pnand %p1653_p7, %p165_p8 }
   0xe   : > { %169 = sbr.rel (%p166_p9) target bundleno = 1353 (0x549), region = 36 }
  0x15   : > { %v196_v0 = vld [vmem:[%s2698_s1] sm:$0xf]  ;;  %v1817_v1 = vmov 2   ;;  %v1818_v2 = vmov 1   ;;  %p191_p10 = scmp.lt.s32.totalorder %s1876_s19, 1  ;;  %v1819_v4 = vmov 3   ;;  %v223_v20 = vlaneseq }
  0x16   : > { %1718 = vset.pattern.permute.xlu1 %v1817_v1  ;;  %1717 = vset.pattern.permute.xlu0 %v1818_v2  ;;  %v197_v3 = vld [vmem:[%s2698_s1 + $0x4] sm:$0xf]  ;;  %v198_v6 = vld [vmem:[%s2698_s1 + $0x8] sm:$0xf]  ;;  %s1820_s12 = smov 17   ;;  %v1821_v9 = vmov 0  }
  0x17   : > { %272 = vperm.xlu1 %1718, %v196_v0   ;;  %256 = vperm.xlu0 %1717, %v196_v0   ;;  %s192_s5 = scalar_select %p191_p10, %s1876_s19, 1  ;;  %v199_v8 = vld [vmem:[%s2698_s1 + $0xc] sm:$0xf]  ;;  %v1941_v10 = vld [vmem:[%s2699_s2] sm:$0xf]  ;;  %v2013_v23 = vshrl.u32 %v223_v20, 7 }
  0x18   : > { %s1822_s20 = smov 16   ;;  %v200_v11 = vld [vmem:[%s2698_s1 + $0x10] sm:$0xf]  ;;  %s1823_s29 = smov 15   ;;  %v201_v12 = vld [vmem:[%s2698_s1 + $0x14] sm:$0xf] }
  0x19   : > { %s1664_s6 = sshll.u32 %s192_s5, 3  ;;  %s1824_s30 = smov 127   ;;  %v202_v13 = vld [vmem:[%s2698_s1 + $0x18] sm:$0xf]  ;;  %v203_v14 = vld [vmem:[%s2698_s1 + $0x1c] sm:$0xf] }
  0x1a   : > { %s1916_s9 = scalar_lea.vmem %s2697_s0, %s1664_s6  ;;  %s1825_s7 = smov 1   ;;  %v204_v15 = vld [vmem:[%s2698_s1 + $0x20] sm:$0xf]  ;;  %v2015_v24 = vand.u32 127, %v223_v20  ;;  %v2018_v25 = vsub.s32 0, %v2013_v23  ;;  %v2028_v27 = vld [vmem:[%s2700_s3 + $0x8] sm:$0xff] }
  0x1b   : > { %338 = vperm.xlu0 %1717, %v197_v3   ;;  %1719 = vset.pattern.permute.xlu1 %v1819_v4  ;;  %v1920_v5 = vld [vmem:[%s1916_s9] sm:$0xff]  ;;  %s1826_s8 = smov 113   ;;  %s1827_s27 = smov 112   ;;  %v2054_v39 = vsub.s32 1, %v2013_v23  ;;  %v2059_v42 = vsub.s32 2, %v2013_v23  ;;  %v2081_v53 = vsub.s32 3, %v2013_v23 }
  0x1c   : > { %219 = vrot.lane.b32.xlu1 %v1920_v5, %s1820_s12  ;;  %v1929_v7 = vcombine.high %v1920_v5, %v1920_v5  ;;  %s1828_s28 = smov 111   ;;  %v2023_v26 = vld [vmem:[%s2700_s3] sm:$0xff]  ;;  %vm225_vm0 = vcmp.lt.s32.totalorder %v2015_v24, 17  ;;  %v2041_v31 = vrot.slane %v2028_v27, %v2018_v25  ;;  %vm307_vm1 = vcmp.lt.s32.totalorder %v2015_v24, 16  ;;  %s1829_s10 = smov [#allocation2]  }
  0x1d   : > { %v2037_v30 = vrot.slane %v2023_v26, %v2018_v25  ;;  %v2074_v51 = vrot.slane %v2023_v26, %v2054_v39  ;;  %v2078_v52 = vrot.slane %v2028_v27, %v2054_v39  ;;  %vm389_vm2 = vcmp.lt.s32.totalorder %v2015_v24, 15  ;;  %s1757_s11 = sshll.u32 %s1829_s10, 4  ;;  %s1758_s11 = int_to_ptr.vmem [resolvable:$false] %s1757_s11 }
  0x1e   : > { %2736 = vst [vmem:[#allocation5_spill] sm:$0xff] %v1929_v7  ;;  %vm471_vm3 = vcmp.lt.s32.totalorder %v2015_v24, 1  ;;  %vm658_vm4 = vcmp.lt.s32.totalorder %v2015_v24, 127  ;;  %vm740_vm5 = vcmp.lt.s32.totalorder %v2015_v24, 113  ;;  %vm822_vm6 = vcmp.lt.s32.totalorder %v2015_v24, 112  ;;  %s1759_s13 = scalar_lea.vmem %s1758_s11, 256 }
  0x1f   : > { %420 = vperm.xlu0 %1717, %v198_v6   ;;  %vm904_vm7 = vcmp.lt.s32.totalorder %v2015_v24, 111  ;;  %vm982_vm8 = vcmask 1043456  }
  0x20   : > { %221 = vrot.lane.b32.xlu1 %v1929_v7, %s1820_s12 }
  0x23   : > { %502 = vperm.xlu0 %1717, %v199_v8  }
  0x24   : > { %288 = vperm.xlu1 %1719, %v196_v0  }
  0x27   : > { %1724 = vset.pattern.permute.xlu0 %v1821_v9 }
  0x28   : > { %240 = vperm.xlu0 %1724, %v196_v0   ;;  %303 = vrot.lane.b32.xlu1 %v1920_v5, %s1822_s20 }
  0x29   : > { %1720 = vset.pattern.permute.xlu1 %v1817_v1 }
  0x2c   : > { %213 = vperm.xlu0 %1724, %v1941_v10   ;;  %305 = vrot.lane.b32.xlu1 %v1929_v7, %s1822_s20 }
  0x30   : > { %322 = vperm.xlu0 %1724, %v197_v3   ;;  %354 = vperm.xlu1 %1720, %v197_v3  }
  0x34   : > { %404 = vperm.xlu0 %1724, %v198_v6   ;;  %1721 = vset.pattern.permute.xlu1 %v1819_v4 }
  0x35   : > { %370 = vperm.xlu1 %1721, %v197_v3  }
  0x38   : > { %486 = vperm.xlu0 %1724, %v199_v8  }
  0x39   : > { %385 = vrot.lane.b32.xlu1 %v1920_v5, %s1823_s29 }
  0x3a   : > { %1722 = vset.pattern.permute.xlu1 %v1817_v1 }
  0x3c   : > { %551 = vperm.xlu0 %1724, %v200_v11  }
  0x3d   : > { %387 = vrot.lane.b32.xlu1 %v1929_v7, %s1823_s29 }
  0x40   : > { %1729 = vset.pattern.permute.xlu0 %v1819_v4 }
  0x41   : > { %629 = vperm.xlu0 %1729, %v200_v11   ;;  %436 = vperm.xlu1 %1722, %v198_v6  }
  0x45   : > { %656 = vrot.lane.b32.xlu0 %v1929_v7, %s1824_s30  ;;  %1723 = vset.pattern.permute.xlu1 %v1819_v4 }
  0x46   : > { %1732 = vset.pattern.permute.xlu0 %v1817_v1  ;;  %452 = vperm.xlu1 %1723, %v198_v6  }
  0x49   : > { %705 = vperm.xlu0 %1732, %v201_v12  }
  0x4a   : > { %467 = vrot.lane.b32.xlu1 %v1920_v5, %s1825_s7 }
  0x4b   : > { %1725 = vset.pattern.permute.xlu1 %v1817_v1 }
  0x4d   : > { %736 = vrot.lane.b32.xlu0 %v1920_v5, %s1826_s8 }
  0x4e   : > { %1735 = vset.pattern.permute.xlu0 %v1818_v2  ;;  %469 = vrot.lane.b32.xlu1 %v1929_v7, %s1825_s7 }
  0x51   : > { %771 = vperm.xlu0 %1735, %v202_v13  }
  0x52   : > { %518 = vperm.xlu1 %1725, %v199_v8  }
  0x55   : > { %853 = vperm.xlu0 %1735, %v203_v14  }
  0x56   : > { %1726 = vset.pattern.permute.xlu1 %v1819_v4 }
  0x57   : > { %534 = vperm.xlu1 %1726, %v199_v8  }
  0x59   : > { %1738 = vset.pattern.permute.xlu0 %v1821_v9 }
  0x5a   : > { %837 = vperm.xlu0 %1738, %v203_v14  }
  0x5b   : > { %1727 = vset.pattern.permute.xlu1 %v1818_v2 }
  0x5c   : > { %577 = vperm.xlu1 %1727, %v200_v11  }
  0x5e   : > { %919 = vperm.xlu0 %1738, %v204_v15  }
  0x60   : > { %1728 = vset.pattern.permute.xlu1 %v1817_v1 }
  0x61   : > { %603 = vperm.xlu1 %1728, %v200_v11  }
  0x62   : > { %1741 = vset.pattern.permute.xlu0 %v1818_v2 }
  0x63   : > { %935 = vperm.xlu0 %1741, %v204_v15  }
  0x65   : > { %1730 = vset.pattern.permute.xlu1 %v1821_v9 }
  0x66   : > { %673 = vperm.xlu1 %1730, %v201_v12  }
  0x67   : > { %1745 = vset.pattern.permute.xlu0 %v1817_v1 }
  0x6a   : > { %654 = vrot.lane.b32.xlu1 %v1920_v5, %s1824_s30 }
  0x6b   : > { %1731 = vset.pattern.permute.xlu1 %v1818_v2 }
  0x6e   : > { %689 = vperm.xlu1 %1731, %v201_v12  }
  0x72   : > { %1733 = vset.pattern.permute.xlu1 %v1819_v4 }
  0x73   : > { %721 = vperm.xlu1 %1733, %v201_v12  }
  0x77   : > { %1734 = vset.pattern.permute.xlu1 %v1821_v9 }
  0x78   : > { %755 = vperm.xlu1 %1734, %v202_v13  }
  0x7c   : > { %738 = vrot.lane.b32.xlu1 %v1929_v7, %s1826_s8 }
  0x7d   : > { %1736 = vset.pattern.permute.xlu1 %v1817_v1 }
  0x80   : > { %787 = vperm.xlu1 %1736, %v202_v13  }
  0x84   : > { %1737 = vset.pattern.permute.xlu1 %v1819_v4 }
  0x85   : > { %803 = vperm.xlu1 %1737, %v202_v13  }
  0x89   : > { %818 = vrot.lane.b32.xlu1 %v1920_v5, %s1827_s27 }
  0x8a   : > { %1739 = vset.pattern.permute.xlu1 %v1817_v1 }
  0x8d   : > { %820 = vrot.lane.b32.xlu1 %v1929_v7, %s1827_s27 }
  0x91   : > { %869 = vperm.xlu1 %1739, %v203_v14  }
  0x95   : > { %1740 = vset.pattern.permute.xlu1 %v1819_v4 }
  0x96   : > { %v2000_v16 = vpop.permute.xlu1 %272  ;;  %v2002_v17 = vpop.permute.xlu0 %256  ;;  %885 = vperm.xlu1 %1740, %v203_v14  }
  0x9a   : > { %v220_v18 = vpop.permute.xlu1 %219  ;;  %v2004_v19 = vpop.permute.xlu0 %338  ;;  %900 = vrot.lane.b32.xlu1 %v1920_v5, %s1828_s28 }
  0x9b   : > { %1742 = vset.pattern.permute.xlu1 %v1817_v1 }
  0x9e   : > { %v222_v21 = vpop.permute.xlu1 %221  ;;  %v2009_v22 = vpop.permute.xlu0 %420  ;;  %902 = vrot.lane.b32.xlu1 %v1929_v7, %s1828_s28 }
  0x9f   : > { %v226_v32 = vsel %vm225_vm0, %v220_v18, %v222_v21  ;;  %v227_v33 = vsel %vm225_vm0, %v222_v21, %v220_v18 }
  0xa0   : > { %v236_v36 = vmul.f32 %v2037_v30, %v227_v33  ;;  %v237_v37 = vmul.f32 %v2041_v31, %v226_v32 }
  0xa2   : > { %951 = vperm.xlu1 %1742, %v204_v15   ;;  %v2030_v28 = vpop.permute.xlu0 %502  ;;  %v246_v40 = vrot.slane %v236_v36, %v2018_v25  ;;  %v250_v41 = vrot.slane %v237_v37, %v2018_v25  ;;  %v262_v45 = vrot.slane %v236_v36, %v2054_v39  ;;  %v266_v46 = vrot.slane %v237_v37, %v2054_v39 }
  0xa3   : > { %v2032_v29 = vpop.permute.xlu1 %288  ;;  %v278_v56 = vrot.slane %v236_v36, %v2059_v42  ;;  %v282_v57 = vrot.slane %v237_v37, %v2059_v42  ;;  %v294_v1 = vrot.slane %v236_v36, %v2081_v53 }
  0xa4   : > { %v267_v58 = vmul.f32 %v262_v45, %v2002_v17  ;;  %v268_v59 = vmul.f32 %v266_v46, %v2002_v17 }
  0xa5   : > { %v283_v3 = vmul.f32 %v278_v56, %v2000_v16  ;;  %v299_v14 = vmul.f32 %v294_v1, %v2032_v29 }
  0xa6   : > { %1743 = vset.pattern.permute.xlu1 %v1819_v4  ;;  %v284_v4 = vmul.f32 %v282_v57, %v2000_v16 }
  0xa7   : > { %967 = vperm.xlu1 %1743, %v204_v15   ;;  %v304_v34 = vpop.permute.xlu1 %303  ;;  %v2048_v35 = vpop.permute.xlu0 %240 }
  0xa8   : > { %v251_v47 = vmul.f32 %v246_v40, %v2048_v35  ;;  %v252_v48 = vmul.f32 %v250_v41, %v2048_v35 }
  0xab   : > { %v306_v38 = vpop.permute.xlu1 %305  ;;  %1744 = vset.pattern.permute.xlu1 %v1818_v2  ;;  %v2061_v43 = vpop.permute.xlu0 %213  ;;  %v298_v2 = vrot.slane %v237_v37, %v2081_v53  ;;  %v2112_v37 = vrot.slane %v2023_v26, %v2059_v42 }
  0xac   : > { %v253_v49 = vadd.f32 %v251_v47, %v2061_v43  ;;  %v254_v50 = vadd.f32 %v252_v48, %v2061_v43  ;;  %v308_v54 = vsel %vm307_vm1, %v304_v34, %v306_v38  ;;  %v309_v55 = vsel %vm307_vm1, %v306_v38, %v304_v34 }
  0xad   : > { %v318_v63 = vmul.f32 %v2074_v51, %v309_v55  ;;  %v319_v0 = vmul.f32 %v2078_v52, %v308_v54  ;;  %v300_v15 = vmul.f32 %v298_v2, %v2032_v29  ;;  %v2116_v38 = vrot.slane %v2028_v27, %v2059_v42 }
  0xae   : > { %v269_v61 = vadd.f32 %v267_v58, %v253_v49  ;;  %v270_v62 = vadd.f32 %v268_v59, %v254_v50 }
  0xaf   : > { %v2064_v44 = vpop.permute.xlu1 %354  ;;  %v328_v11 = vrot.slane %v318_v63, %v2018_v25  ;;  %v332_v12 = vrot.slane %v319_v0, %v2018_v25  ;;  %v2101_v13 = vpop.permute.xlu0 %322  ;;  %v344_v34 = vrot.slane %v318_v63, %v2054_v39  ;;  %v348_v36 = vrot.slane %v319_v0, %v2054_v39 }
  0xb0   : > { %v285_v8 = vadd.f32 %v283_v3, %v269_v61  ;;  %v286_v9 = vadd.f32 %v284_v4, %v270_v62  ;;  %v360_v48 = vrot.slane %v318_v63, %v2059_v42  ;;  %v364_v49 = vrot.slane %v319_v0, %v2059_v42 }
  0xb1   : > { %v333_v32 = vmul.f32 %v328_v11, %v2101_v13  ;;  %v334_v33 = vmul.f32 %v332_v12, %v2101_v13  ;;  %v349_v50 = vmul.f32 %v344_v34, %v2004_v19  ;;  %v350_v54 = vmul.f32 %v348_v36, %v2004_v19 }
  0xb2   : > { %v301_v20 = vadd.f32 %v299_v14, %v285_v8  ;;  %v302_v21 = vadd.f32 %v300_v15, %v286_v9  ;;  %v365_v61 = vmul.f32 %v360_v48, %v2064_v44  ;;  %v366_v62 = vmul.f32 %v364_v49, %v2064_v44 }
  0xb3   : > { %v2136_v3 = vpop.permute.xlu0 %404  ;;  %v376_v9 = vrot.slane %v318_v63, %v2081_v53  ;;  %v380_v11 = vrot.slane %v319_v0, %v2081_v53 }
  0xb4   : > { %v2091_v60 = vpop.permute.xlu1 %370  ;;  %v335_v46 = vadd.f32 %v333_v32, %v301_v20  ;;  %v336_v47 = vadd.f32 %v334_v33, %v302_v21  ;;  %v2147_v20 = vrot.slane %v2023_v26, %v2081_v53  ;;  %v2151_v21 = vrot.slane %v2028_v27, %v2081_v53 }
  0xb5   : > { %v381_v12 = vmul.f32 %v376_v9, %v2091_v60  ;;  %v382_v14 = vmul.f32 %v380_v11, %v2091_v60 }
  0xb6   : > { %v351_v58 = vadd.f32 %v349_v50, %v335_v46  ;;  %v352_v59 = vadd.f32 %v350_v54, %v336_v47 }
  0xb7   : > { %v2173_v9 = vpop.permute.xlu0 %486 }
  0xb8   : > { %v386_v6 = vpop.permute.xlu1 %385  ;;  %v368_v8 = vadd.f32 %v366_v62, %v352_v59 }
  0xba   : > { %v384_v32 = vadd.f32 %v382_v14, %v368_v8 }
  0xbc   : > { %v388_v18 = vpop.permute.xlu1 %387 }
  0xbd   : > { %v390_v41 = vsel %vm389_vm2, %v386_v6, %v388_v18  ;;  %v391_v45 = vsel %vm389_vm2, %v388_v18, %v386_v6  ;;  %v367_v6 = vadd.f32 %v365_v61, %v351_v58 }
  0xbe   : > { %v400_v55 = vmul.f32 %v2112_v37, %v391_v45  ;;  %v401_v56 = vmul.f32 %v2116_v38, %v390_v41 }
  0xbf   : > { %v383_v0 = vadd.f32 %v381_v12, %v367_v6 }
  0xc0   : > { %v2118_v40 = vpop.permute.xlu1 %436  ;;  %v410_v1 = vrot.slane %v400_v55, %v2018_v25  ;;  %v414_v2 = vrot.slane %v401_v56, %v2018_v25  ;;  %v426_v33 = vrot.slane %v400_v55, %v2054_v39  ;;  %v430_v34 = vrot.slane %v401_v56, %v2054_v39 }
  0xc1   : > { %v442_v47 = vrot.slane %v400_v55, %v2059_v42  ;;  %v446_v48 = vrot.slane %v401_v56, %v2059_v42  ;;  %v458_v14 = vrot.slane %v400_v55, %v2081_v53  ;;  %v560_v55 = vsub.s32 4, %v2013_v23 }
  0xc2   : > { %v415_v15 = vmul.f32 %v410_v1, %v2136_v3  ;;  %v416_v18 = vmul.f32 %v414_v2, %v2136_v3  ;;  %v431_v50 = vmul.f32 %v426_v33, %v2009_v22  ;;  %v432_v54 = vmul.f32 %v430_v34, %v2009_v22 }
  0xc3   : > { %v447_v1 = vmul.f32 %v442_v47, %v2118_v40  ;;  %v448_v2 = vmul.f32 %v446_v48, %v2118_v40 }
  0xc4   : > { %v417_v45 = vadd.f32 %v415_v15, %v383_v0  ;;  %v418_v46 = vadd.f32 %v416_v18, %v384_v32  ;;  %v462_v15 = vrot.slane %v401_v56, %v2081_v53 }
  0xc5   : > { %v2130_v57 = vpop.permute.xlu1 %452 }
  0xc6   : > { %v433_v61 = vadd.f32 %v431_v50, %v417_v45  ;;  %v434_v62 = vadd.f32 %v432_v54, %v418_v46  ;;  %v463_v18 = vmul.f32 %v458_v14, %v2130_v57 }
  0xc8   : > { %v449_v11 = vadd.f32 %v447_v1, %v433_v61  ;;  %v450_v12 = vadd.f32 %v448_v2, %v434_v62  ;;  %v2190_v61 = vpop.permute.xlu0 %551  ;;  %v557_v1 = vrot.slane %v1920_v5, %v2018_v25  ;;  %v561_v2 = vrot.slane %v1920_v5, %v560_v55 }
  0xc9   : > { %v468_v4 = vpop.permute.xlu1 %467  ;;  %2739 = vst [vmem:[#allocation8_spill] sm:$0xff] %v2190_v61 }
  0xca   : > { %v465_v34 = vadd.f32 %v463_v18, %v449_v11 }
  0xcc   : > { %v2203_v18 = vpop.permute.xlu0 %629 }
  0xcd   : > { %v470_v63 = vpop.permute.xlu1 %469  ;;  %2740 = vst [vmem:[#allocation9_spill] sm:$0xff] %v2203_v18 }
  0xce   : > { %v472_v36 = vsel %vm471_vm3, %v468_v4, %v470_v63  ;;  %v473_v41 = vsel %vm471_vm3, %v470_v63, %v468_v4  ;;  %v464_v63 = vmul.f32 %v462_v15, %v2130_v57 }
  0xcf   : > { %v482_v58 = vmul.f32 %v2147_v20, %v473_v41  ;;  %v483_v59 = vmul.f32 %v2151_v21, %v472_v36 }
  0xd0   : > { %v466_v36 = vadd.f32 %v464_v63, %v450_v12  ;;  %v2199_v12 = vsub.s32 6, %v2013_v23  ;;  %v567_v63 = vrot.slane %v557_v1, %v2018_v25  ;;  %v657_v1 = vpop.permute.xlu0 %656 }
  0xd1   : > { %v2161_v49 = vpop.permute.xlu1 %518  ;;  %v492_v4 = vrot.slane %v482_v58, %v2018_v25  ;;  %v496_v6 = vrot.slane %v483_v59, %v2018_v25  ;;  %v508_v41 = vrot.slane %v482_v58, %v2054_v39  ;;  %v512_v45 = vrot.slane %v483_v59, %v2054_v39 }
  0xd2   : > { %v524_v47 = vrot.slane %v482_v58, %v2059_v42  ;;  %v528_v48 = vrot.slane %v483_v59, %v2059_v42  ;;  %v540_v55 = vrot.slane %v482_v58, %v2081_v53 }
  0xd3   : > { %v497_v0 = vmul.f32 %v492_v4, %v2173_v9  ;;  %v498_v32 = vmul.f32 %v496_v6, %v2173_v9  ;;  %v513_v50 = vmul.f32 %v508_v41, %v2030_v28  ;;  %v514_v54 = vmul.f32 %v512_v45, %v2030_v28 }
  0xd4   : > { %v586_v4 = vsub.s32 5, %v2013_v23  ;;  %v529_v14 = vmul.f32 %v524_v47, %v2161_v49  ;;  %v530_v15 = vmul.f32 %v528_v48, %v2161_v49  ;;  %v613_v47 = vrot.slane %v1920_v5, %v2199_v12 }
  0xd5   : > { %v499_v46 = vadd.f32 %v497_v0, %v465_v34  ;;  %v500_v56 = vadd.f32 %v498_v32, %v466_v36  ;;  %v571_v0 = vrot.slane %v561_v2, %v2018_v25  ;;  %v583_v32 = vrot.slane %v1920_v5, %v2054_v39 }
  0xd6   : > { %v2171_v8 = vpop.permute.xlu1 %534  ;;  %v587_v34 = vrot.slane %v1920_v5, %v586_v4  ;;  %v2227_v2 = vrot.slane %v2023_v26, %v586_v4  ;;  %v623_v7 = vrot.slane %v613_v47, %v2059_v42 }
  0xd7   : > { %2737 = vst [vmem:[#allocation6_spill] sm:$0xff] %v2171_v8  ;;  %v515_v6 = vadd.f32 %v513_v50, %v499_v46  ;;  %v516_v11 = vadd.f32 %v514_v54, %v500_v56  ;;  %v544_v46 = vrot.slane %v483_v59, %v2081_v53  ;;  %v609_v56 = vrot.slane %v1920_v5, %v2059_v42 }
  0xd8   : > { %v545_v48 = vmul.f32 %v540_v55, %v2171_v8  ;;  %v2221_v54 = vsub.s32 7, %v2013_v23  ;;  %v593_v58 = vrot.slane %v583_v32, %v2054_v39  ;;  %v597_v59 = vrot.slane %v587_v34, %v2054_v39 }
  0xd9   : > { %v531_v41 = vadd.f32 %v529_v14, %v515_v6  ;;  %v532_v45 = vadd.f32 %v530_v15, %v516_v11  ;;  %v546_v50 = vmul.f32 %v544_v46, %v2171_v8  ;;  %v2230_v6 = vrot.slane %v2028_v27, %v586_v4 }
  0xda   : > { %v572_v55 = vmul.f32 %v567_v63, %v2190_v61  ;;  %v573_v23 = vmul.f32 %v571_v0, %v2190_v61  ;;  %v619_v34 = vrot.slane %v609_v56, %v2059_v42  ;;  %v635_v4 = vrot.slane %v1920_v5, %v2081_v53 }
  0xdb   : > { %v2181_v33 = vpop.permute.xlu1 %577  ;;  %v547_v14 = vadd.f32 %v545_v48, %v531_v41  ;;  %v548_v15 = vadd.f32 %v546_v50, %v532_v45  ;;  %v639_v41 = vrot.slane %v1920_v5, %v2221_v54 }
  0xdc   : > { %2738 = vst [vmem:[#allocation7_spill] sm:$0xff] %v2181_v33  ;;  %v598_v63 = vmul.f32 %v593_v58, %v2181_v33  ;;  %v599_v0 = vmul.f32 %v597_v59, %v2181_v33  ;;  %v645_v61 = vrot.slane %v635_v4, %v2081_v53 }
  0xdd   : > { %v574_v48 = vadd.f32 %v572_v55, %v547_v14  ;;  %v575_v50 = vadd.f32 %v573_v23, %v548_v15  ;;  %v649_v5 = vrot.slane %v639_v41, %v2081_v53 }
  0xde   : > { %v650_v23 = vmul.f32 %v645_v61, %v2203_v18  ;;  %v2271_v61 = vrot.slane %v2023_v26, %v2199_v12 }
  0xdf   : > { %v600_v8 = vadd.f32 %v598_v63, %v574_v48  ;;  %v601_v58 = vadd.f32 %v599_v0, %v575_v50  ;;  %v2275_v50 = vrot.slane %v2028_v27, %v2199_v12 }
  0xe0   : > { %v2192_v62 = vpop.permute.xlu1 %603 }
  0xe1   : > { %v624_v47 = vmul.f32 %v619_v34, %v2192_v62 }
  0xe3   : > { %v626_v15 = vadd.f32 %v624_v47, %v600_v8 }
  0xe5   : > { %v2210_v36 = vpop.permute.xlu1 %673  ;;  %v652_v41 = vadd.f32 %v650_v23, %v626_v15 }
  0xe6   : > { %2741 = vst [vmem:[#allocation10_spill] sm:$0xff] %v2210_v36 }
  0xe9   : > { %v655_v11 = vpop.permute.xlu1 %654 }
  0xea   : > { %v659_v46 = vsel %vm658_vm4, %v655_v11, %v657_v1  ;;  %v660_v32 = vsel %vm658_vm4, %v657_v1, %v655_v11  ;;  %v625_v11 = vmul.f32 %v623_v7, %v2192_v62 }
  0xeb   : > { %v669_v1 = vmul.f32 %v2227_v2, %v659_v46  ;;  %v670_v56 = vmul.f32 %v2230_v6, %v660_v32  ;;  %v651_v46 = vmul.f32 %v649_v5, %v2203_v18  ;;  %v2260_v32 = vpop.permute.xlu0 %705 }
  0xec   : > { %v627_v55 = vadd.f32 %v625_v11, %v601_v58 }
  0xed   : > { %v2246_v45 = vpop.permute.xlu1 %689  ;;  %v679_v59 = vrot.slane %v669_v1, %v2018_v25  ;;  %v683_v33 = vrot.slane %v670_v56, %v2018_v25  ;;  %v695_v0 = vrot.slane %v669_v1, %v2054_v39  ;;  %v699_v48 = vrot.slane %v670_v56, %v2054_v39 }
  0xee   : > { %2742 = vst [vmem:[#allocation11_spill] sm:$0xff] %v2246_v45  ;;  %v653_v63 = vadd.f32 %v651_v46, %v627_v55  ;;  %v711_v11 = vrot.slane %v669_v1, %v2059_v42  ;;  %v715_v5 = vrot.slane %v670_v56, %v2059_v42 }
  0xef   : > { %v684_v7 = vmul.f32 %v679_v59, %v2210_v36  ;;  %v685_v34 = vmul.f32 %v683_v33, %v2210_v36  ;;  %v737_v8 = vpop.permute.xlu0 %736  ;;  %v700_v59 = vmul.f32 %v695_v0, %v2246_v45  ;;  %v701_v15 = vmul.f32 %v699_v48, %v2246_v45 }
  0xf0   : > { %v717_v0 = vmul.f32 %v715_v5, %v2260_v32 }
  0xf1   : > { %v686_v33 = vadd.f32 %v684_v7, %v652_v41  ;;  %v687_v47 = vadd.f32 %v685_v34, %v653_v63  ;;  %v716_v63 = vmul.f32 %v711_v11, %v2260_v32 }
  0xf2   : > { %v2256_v14 = vpop.permute.xlu1 %721 }
  0xf3   : > { %v702_v7 = vadd.f32 %v700_v59, %v686_v33  ;;  %v703_v34 = vadd.f32 %v701_v15, %v687_v47 }
  0xf5   : > { %v718_v36 = vadd.f32 %v716_v63, %v702_v7  ;;  %v719_v18 = vadd.f32 %v717_v0, %v703_v34  ;;  %v2308_v0 = vrot.slane %v2023_v26, %v2221_v54 }
  0xf7   : > { %v2264_v4 = vpop.permute.xlu1 %755 }
  0xfb   : > { %v739_v58 = vpop.permute.xlu1 %738 }
  0xfc   : > { %v741_v55 = vsel %vm740_vm5, %v737_v8, %v739_v58  ;;  %v742_v23 = vsel %vm740_vm5, %v739_v58, %v737_v8  ;;  %v727_v8 = vrot.slane %v669_v1, %v2081_v53  ;;  %v731_v58 = vrot.slane %v670_v56, %v2081_v53 }
  0xfd   : > { %v751_v12 = vmul.f32 %v2271_v61, %v741_v55  ;;  %v752_v46 = vmul.f32 %v2275_v50, %v742_v23  ;;  %v2301_v23 = vpop.permute.xlu0 %771 }
  0xfe   : > { %v732_v55 = vmul.f32 %v727_v8, %v2256_v14  ;;  %v733_v33 = vmul.f32 %v731_v58, %v2256_v14  ;;  %2745 = vst [vmem:[#allocation14_spill] sm:$0xff] %v2301_v23 }
  0xff   : > { %v2287_v41 = vpop.permute.xlu1 %787  ;;  %v761_v48 = vrot.slane %v751_v12, %v2018_v25  ;;  %v765_v45 = vrot.slane %v752_v46, %v2018_v25  ;;  %v777_v7 = vrot.slane %v751_v12, %v2054_v39  ;;  %v781_v1 = vrot.slane %v752_v46, %v2054_v39 }
 0x100   : > { %2743 = vst [vmem:[#allocation12_spill] sm:$0xff] %v2287_v41  ;;  %v734_v5 = vadd.f32 %v732_v55, %v718_v36  ;;  %v735_v15 = vadd.f32 %v733_v33, %v719_v18  ;;  %v793_v18 = vrot.slane %v751_v12, %v2059_v42  ;;  %v797_v36 = vrot.slane %v752_v46, %v2059_v42 }
 0x101   : > { %v766_v47 = vmul.f32 %v761_v48, %v2264_v4  ;;  %v767_v11 = vmul.f32 %v765_v45, %v2264_v4  ;;  %v2312_v45 = vrot.slane %v2028_v27, %v2221_v54  ;;  %v782_v48 = vmul.f32 %v777_v7, %v2301_v23  ;;  %v2318_v58 = vpop.permute.xlu0 %853 }
 0x102   : > { %v783_v8 = vmul.f32 %v781_v1, %v2301_v23  ;;  %2747 = vst [vmem:[#allocation16_spill] sm:$0xff] %v2318_v58  ;;  %v798_v54 = vmul.f32 %v793_v18, %v2287_v41 }
 0x103   : > { %v768_v34 = vadd.f32 %v766_v47, %v734_v5  ;;  %v769_v56 = vadd.f32 %v767_v11, %v735_v15  ;;  %2746 = vst [vmem:[#allocation15_spill] sm:$0xff] %v2312_v45  ;;  %v799_v11 = vmul.f32 %v797_v36, %v2287_v41 }
 0x104   : > { %v2299_v59 = vpop.permute.xlu1 %803 }
 0x105   : > { %2744 = vst [vmem:[#allocation13_spill] sm:$0xff] %v2299_v59  ;;  %v784_v55 = vadd.f32 %v782_v48, %v768_v34  ;;  %v785_v33 = vadd.f32 %v783_v8, %v769_v56  ;;  %v809_v34 = vrot.slane %v751_v12, %v2081_v53  ;;  %v813_v56 = vrot.slane %v752_v46, %v2081_v53  ;;  %v2332_v8 = vpop.permute.xlu0 %837 }
 0x106   : > { %2749 = vst [vmem:[#allocation18_spill] sm:$0xff] %v2332_v8 }
 0x107   : > { %v800_v7 = vadd.f32 %v798_v54, %v784_v55  ;;  %v801_v1 = vadd.f32 %v799_v11, %v785_v33  ;;  %v814_v36 = vmul.f32 %v809_v34, %v2299_v59 }
 0x108   : > { %v819_v63 = vpop.permute.xlu1 %818 }
 0x109   : > { %v816_v33 = vadd.f32 %v814_v36, %v800_v7 }
 0x10c   : > { %v821_v47 = vpop.permute.xlu1 %820 }
 0x10d   : > { %v823_v26 = vsel %vm822_vm6, %v819_v63, %v821_v47  ;;  %v824_v27 = vsel %vm822_vm6, %v821_v47, %v819_v63  ;;  %v815_v47 = vmul.f32 %v813_v56, %v2299_v59 }
 0x10e   : > { %v833_v5 = vmul.f32 %v2308_v0, %v823_v26  ;;  %v834_v15 = vmul.f32 %v2312_v45, %v824_v27 }
 0x10f   : > { %v817_v12 = vadd.f32 %v815_v47, %v801_v1  ;;  %v2354_v47 = vld [vmem:[%s2700_s3 + $0x10] ss:$0 sm:$0xff] }
 0x110   : > { %v2330_v48 = vpop.permute.xlu1 %869  ;;  %v843_v63 = vrot.slane %v833_v5, %v2018_v25  ;;  %v847_v18 = vrot.slane %v834_v15, %v2018_v25  ;;  %v859_v46 = vrot.slane %v833_v5, %v2054_v39  ;;  %v863_v27 = vrot.slane %v834_v15, %v2054_v39  ;;  %2751 = vst [vmem:[#allocation20_spill] sm:$0xff] %v2354_v47 }
 0x111   : > { %2748 = vst [vmem:[#allocation17_spill] sm:$0xff] %v2330_v48  ;;  %v875_v56 = vrot.slane %v833_v5, %v2059_v42 }
 0x112   : > { %v848_v26 = vmul.f32 %v843_v63, %v2332_v8  ;;  %v849_v55 = vmul.f32 %v847_v18, %v2332_v8  ;;  %v864_v23 = vmul.f32 %v859_v46, %v2318_v58  ;;  %v865_v34 = vmul.f32 %v863_v27, %v2318_v58  ;;  %v2363_v46 = vpop.permute.xlu0 %919 }
 0x113   : > { %v879_v63 = vrot.slane %v834_v15, %v2059_v42  ;;  %v880_v1 = vmul.f32 %v875_v56, %v2330_v48  ;;  %2753 = vst [vmem:[#allocation22_spill] sm:$0xff] %v2363_v46 }
 0x114   : > { %v850_v11 = vadd.f32 %v848_v26, %v816_v33  ;;  %v851_v41 = vadd.f32 %v849_v55, %v817_v12  ;;  %v2359_v26 = vld [vmem:[%s2700_s3 + $0x18] ss:$0 sm:$0xff]  ;;  %v891_v55 = vrot.slane %v833_v5, %v2081_v53 }
 0x115   : > { %v2342_v54 = vpop.permute.xlu1 %885  ;;  %v881_v36 = vmul.f32 %v879_v63, %v2330_v48  ;;  %2752 = vst [vmem:[#allocation21_spill] sm:$0xff] %v2359_v26 }
 0x116   : > { %2750 = vst [vmem:[#allocation19_spill] sm:$0xff] %v2342_v54  ;;  %v866_v18 = vadd.f32 %v864_v23, %v850_v11  ;;  %v867_v7 = vadd.f32 %v865_v34, %v851_v41  ;;  %v895_v41 = vrot.slane %v834_v15, %v2081_v53  ;;  %v896_v63 = vmul.f32 %v891_v55, %v2342_v54 }
 0x118   : > { %v882_v33 = vadd.f32 %v880_v1, %v866_v18  ;;  %v883_v12 = vadd.f32 %v881_v36, %v867_v7  ;;  %v897_v5 = vmul.f32 %v895_v41, %v2342_v54 }
 0x119   : > { %v901_v59 = vpop.permute.xlu1 %900 }
 0x11a   : > { %v898_v48 = vadd.f32 %v896_v63, %v882_v33 }
 0x11c   : > { %v2766_v24 = vld [vmem:[#allocation21_spill] sm:$0xff] }
 0x11d   : > { %v903_v23 = vpop.permute.xlu1 %902 }
 0x11e   : > { %v905_v27 = vsel %vm904_vm7, %v901_v59, %v903_v23  ;;  %v906_v11 = vsel %vm904_vm7, %v903_v23, %v901_v59  ;;  %v899_v59 = vadd.f32 %v897_v5, %v883_v12  ;;  %v2379_v23 = vpop.permute.xlu0 %935 }
 0x11f   : > { %v915_v34 = vmul.f32 %v2354_v47, %v905_v27  ;;  %v916_v56 = vmul.f32 %v2359_v26, %v906_v11 }
 0x121   : > { %v925_v15 = vrot.slane %v915_v34, %v2018_v25  ;;  %v929_v18 = vrot.slane %v916_v56, %v2018_v25  ;;  %v941_v7 = vrot.slane %v915_v34, %v2054_v39  ;;  %v945_v1 = vrot.slane %v916_v56, %v2054_v39  ;;  %v2377_v36 = vpop.permute.xlu1 %951 }
 0x122   : > { %v957_v41 = vrot.slane %v915_v34, %v2059_v42  ;;  %v961_v11 = vrot.slane %v916_v56, %v2059_v42  ;;  %v973_v8 = vrot.slane %v915_v34, %v2081_v53  ;;  %v977_v33 = vrot.slane %v916_v56, %v2081_v53 }
 0x123   : > { %v930_v27 = vmul.f32 %v925_v15, %v2363_v46  ;;  %v931_v55 = vmul.f32 %v929_v18, %v2363_v46  ;;  %v946_v26 = vmul.f32 %v941_v7, %v2379_v23  ;;  %v947_v47 = vmul.f32 %v945_v1, %v2379_v23 }
 0x124   : > { %v962_v15 = vmul.f32 %v957_v41, %v2377_v36  ;;  %v963_v18 = vmul.f32 %v961_v11, %v2377_v36 }
 0x125   : > { %v932_v54 = vadd.f32 %v930_v27, %v898_v48  ;;  %v933_v58 = vadd.f32 %v931_v55, %v899_v59 }
 0x126   : > { %v2389_v12 = vpop.permute.xlu1 %967 }
 0x127   : > { %v948_v63 = vadd.f32 %v946_v26, %v932_v54  ;;  %v949_v5 = vadd.f32 %v947_v47, %v933_v58  ;;  %v978_v48 = vmul.f32 %v973_v8, %v2389_v12  ;;  %v979_v7 = vmul.f32 %v977_v33, %v2389_v12 }
 0x129   : > { %v964_v46 = vadd.f32 %v962_v15, %v948_v63  ;;  %v965_v45 = vadd.f32 %v963_v18, %v949_v5 }
 0x12b   : > { %v980_v1 = vadd.f32 %v978_v48, %v964_v46  ;;  %v981_v59 = vadd.f32 %v979_v7, %v965_v45 }
 0x12d   : > { %v983_v34 = vsel %vm982_vm8, %v980_v1, 0.0  ;;  %v984_v56 = vsel %vm982_vm8, %v981_v59, 0.0  ;;  %v989_v27 = vmul.f32 %v980_v1, %v980_v1  ;;  %v990_v54 = vmul.f32 %v981_v59, %v981_v59 }
 0x12e   : > { %v985_v58 = vadd.f32 %v984_v56, %v983_v34 }
 0x12f   : > { %v991_v47 = vsel %vm982_vm8, %v989_v27, 0.0  ;;  %v992_v26 = vsel %vm982_vm8, %v990_v54, 0.0 }
 0x130   : > { %986 = vadd.xlane.f32.xlu0 %v985_v58  ;;  %v993_v55 = vadd.f32 %v992_v26, %v991_v47 }
 0x132   : > { %994 = vadd.xlane.f32.xlu1 %v993_v55 }
 0x1bd   : > { %v987_v8 = vpop.xlane.xlu0 %986 }
 0x1be   : > { %v988_v41 = vmul.f32 0.00390625, %v987_v8 }
 0x1bf   : > { %v995_v11 = vpop.xlane.xlu1 %994 }
 0x1c0   : > { %v997_v33 = vmul.f32 %v988_v41, %v988_v41  ;;  %v996_v46 = vmul.f32 0.00390625, %v995_v11 }
 0x1c2   : > { %v998_v45 = vsub.f32 %v996_v46, %v997_v33 }
 0x1c4   : > { %v999_v63 = vadd.f32 1e-05, %v998_v45 }
 0x1c6   : > { %1747 = vrsqrt.f32 %v999_v63 }
 0x1d0   : > { %v1748_v5 = vpop.eup %1747 }
 0x1d1   : > { %v1001_v15 = vmul.f32 %v1748_v5, %v1941_v10 }
 0x1d3   : > { %1010 = vperm.xlu1 %1744, %v1001_v15   ;;  %v1002_v18 = vmul.f32 %v1001_v15, %v988_v41 }
 0x1d5   : > { %1004 = vrot.lane.b32.xlu0 %v1002_v18, %s1825_s7 }
 0x247   : > { %v1005_v48 = vpop.permute.xlu0 %1004 }
 0x248   : > { %v1007_v7 = vsub.f32 %v1941_v10, %v1005_v48 }
 0x24a   : > { %1017 = vperm.xlu0 %1745, %v1007_v7  }
 0x252   : > { %v1011_v34 = vpop.permute.xlu1 %1010 }
 0x253   : > { %v1013_v56 = vmul.f32 %v1011_v34, %v980_v1  ;;  %v1014_v27 = vmul.f32 %v1011_v34, %v981_v59 }
 0x2c9   : > { %v1018_v54 = vpop.permute.xlu0 %1017 }
 0x2ca   : > { %v1020_v58 = vadd.f32 %v1018_v54, %v1013_v56  ;;  %v1021_v47 = vadd.f32 %v1018_v54, %v1014_v27 }
 0x2cc   : > { %vm1022_vm9 = vcmp.ge.f32.partialorder %v1020_v58, 0.0  ;;  %v1024_v26 = vmul.f32 0.01, %v1020_v58  ;;  %v1025_v55 = vmul.f32 0.01, %v1021_v47  ;;  %vm1023_vm10 = vcmp.ge.f32.partialorder %v1021_v47, 0.0 }
 0x2ce   : > { %v2402_v8 = vsel %vm1022_vm9, %v1020_v58, %v1024_v26  ;;  %v2408_v10 = vsel %vm1023_vm10, %v1021_v47, %v1025_v55 }
 0x2cf   : > { %1084 = vrot.lane.b32.xlu0 %v2402_v8, %s1822_s20  ;;  %1028 = vrot.lane.b32.xlu1 %v2402_v8, %s1820_s12 }
 0x2d3   : > { %1140 = vrot.lane.b32.xlu0 %v2402_v8, %s1823_s29  ;;  %1030 = vrot.lane.b32.xlu1 %v2408_v10, %s1820_s12 }
 0x2d7   : > { %1196 = vrot.lane.b32.xlu0 %v2402_v8, %s1825_s7  ;;  %1086 = vrot.lane.b32.xlu1 %v2408_v10, %s1822_s20 }
 0x2db   : > { %1300 = vrot.lane.b32.xlu0 %v2402_v8, %s1824_s30  ;;  %1142 = vrot.lane.b32.xlu1 %v2408_v10, %s1823_s29  ;;  %s188_s29 = sand.u32 1, %s1807_s16  }
 0x2df   : > { %1356 = vrot.lane.b32.xlu0 %v2402_v8, %s1826_s8  ;;  %1198 = vrot.lane.b32.xlu1 %v2408_v10, %s1825_s7 }
 0x2e3   : > { %1412 = vrot.lane.b32.xlu0 %v2402_v8, %s1827_s27  ;;  %1302 = vrot.lane.b32.xlu1 %v2408_v10, %s1824_s30  ;;  %s1654_s30 = sshll.u32 %s188_s29, 3 }
 0x2e7   : > { %1468 = vrot.lane.b32.xlu0 %v2402_v8, %s1828_s28  ;;  %1358 = vrot.lane.b32.xlu1 %v2408_v10, %s1826_s8  ;;  %s1665_s8 = sshll.u32 %s1876_s19, 7  ;;  %s1577_s19 = scalar_lea.sflag [#allocation3], %s188_s29 }
 0x2e8   : > { %s2655_s6 = scalar_lea.hbm %s2701_s4, %s1665_s8 }
 0x2eb   : > { %1414 = vrot.lane.b32.xlu1 %v2408_v10, %s1827_s27  ;;  %s190_s27 = scalar_lea.vmem [#allocation2], %s1654_s30 }
 0x2ef   : > { %1470 = vrot.lane.b32.xlu1 %v2408_v10, %s1828_s28  ;;  %s1591_s28 = sshll.u32 %s190_s27, 4  ;;  %s2657_s28 = int_to_ptr.vmem [resolvable:$true] %s1591_s28 }
 0x2f0   : > { %p1760_p0 = scmp.lt.s32.totalorder %s2657_s28, %s1758_s11 }
 0x341   : > { %v1029_v1 = vpop.permute.xlu1 %1028  ;;  %v1085_v45 = vpop.permute.xlu0 %1084 }
 0x345   : > { %v1031_v59 = vpop.permute.xlu1 %1030 }
 0x346   : > { %v1032_v41 = vsel %vm225_vm0, %v1029_v1, %v1031_v59  ;;  %v1033_v11 = vsel %vm225_vm0, %v1031_v59, %v1029_v1 }
 0x347   : > { %v1034_v33 = vmul.f32 %v1033_v11, %v2037_v30  ;;  %v1035_v46 = vmul.f32 %v1032_v41, %v2041_v31 }
 0x349   : > { %v1039_v63 = vrot.slane %v1034_v33, %v2018_v25  ;;  %v1043_v5 = vrot.slane %v1035_v46, %v2018_v25  ;;  %v1051_v15 = vrot.slane %v1034_v33, %v2054_v39  ;;  %v1055_v18 = vrot.slane %v1035_v46, %v2054_v39  ;;  %v1087_v48 = vpop.permute.xlu1 %1086 }
 0x34a   : > { %v1063_v7 = vrot.slane %v1034_v33, %v2059_v42  ;;  %v1067_v34 = vrot.slane %v1035_v46, %v2059_v42  ;;  %v1075_v54 = vrot.slane %v1034_v33, %v2081_v53  ;;  %v1079_v58 = vrot.slane %v1035_v46, %v2081_v53 }
 0x34b   : > { %v1044_v56 = vmul.f32 %v1039_v63, %v2048_v35  ;;  %v1045_v30 = vmul.f32 %v1043_v5, %v2048_v35  ;;  %v1056_v31 = vmul.f32 %v1051_v15, %v2002_v17  ;;  %v1057_v27 = vmul.f32 %v1055_v18, %v2002_v17  ;;  %v1141_v35 = vpop.permute.xlu0 %1140 }
 0x34c   : > { %v1088_v55 = vsel %vm307_vm1, %v1085_v45, %v1087_v48  ;;  %v1089_v1 = vsel %vm307_vm1, %v1087_v48, %v1085_v45  ;;  %v1068_v41 = vmul.f32 %v1063_v7, %v2000_v16  ;;  %v1069_v17 = vmul.f32 %v1067_v34, %v2000_v16 }
 0x34d   : > { %v1046_v47 = vadd.f32 %v1044_v56, %v2061_v43  ;;  %v1047_v26 = vadd.f32 %v1045_v30, %v2061_v43  ;;  %v1143_v59 = vpop.permute.xlu1 %1142  ;;  %v1090_v11 = vmul.f32 %v1089_v1, %v2074_v51  ;;  %v1091_v33 = vmul.f32 %v1088_v55, %v2078_v52 }
 0x34e   : > { %v1144_v43 = vsel %vm389_vm2, %v1141_v35, %v1143_v59  ;;  %v1145_v5 = vsel %vm389_vm2, %v1143_v59, %v1141_v35  ;;  %v1080_v45 = vmul.f32 %v1075_v54, %v2032_v29  ;;  %v1081_v15 = vmul.f32 %v1079_v58, %v2032_v29 }
 0x34f   : > { %v1058_v46 = vadd.f32 %v1056_v31, %v1046_v47  ;;  %v1059_v63 = vadd.f32 %v1057_v27, %v1047_v26  ;;  %v1095_v18 = vrot.slane %v1090_v11, %v2018_v25  ;;  %v1099_v16 = vrot.slane %v1091_v33, %v2018_v25 }
 0x350   : > { %v1107_v52 = vrot.slane %v1090_v11, %v2054_v39  ;;  %v1111_v7 = vrot.slane %v1091_v33, %v2054_v39  ;;  %v1119_v34 = vrot.slane %v1090_v11, %v2059_v42  ;;  %v1123_v56 = vrot.slane %v1091_v33, %v2059_v42 }
 0x351   : > { %v1070_v48 = vadd.f32 %v1068_v41, %v1058_v46  ;;  %v1071_v51 = vadd.f32 %v1069_v17, %v1059_v63  ;;  %v1146_v30 = vmul.f32 %v1145_v5, %v2112_v37  ;;  %v1147_v31 = vmul.f32 %v1144_v43, %v2116_v38  ;;  %v1199_v41 = vpop.permute.xlu1 %1198 }
 0x352   : > { %v1100_v54 = vmul.f32 %v1095_v18, %v2101_v13  ;;  %v1101_v58 = vmul.f32 %v1099_v16, %v2101_v13  ;;  %v1131_v47 = vrot.slane %v1090_v11, %v2081_v53  ;;  %v1135_v26 = vrot.slane %v1091_v33, %v2081_v53  ;;  %v1197_v11 = vpop.permute.xlu0 %1196 }
 0x353   : > { %v1082_v27 = vadd.f32 %v1080_v45, %v1070_v48  ;;  %v1083_v29 = vadd.f32 %v1081_v15, %v1071_v51  ;;  %v1112_v59 = vmul.f32 %v1107_v52, %v2004_v19  ;;  %v1113_v35 = vmul.f32 %v1111_v7, %v2004_v19 }
 0x354   : > { %v1151_v37 = vrot.slane %v1146_v30, %v2018_v25  ;;  %v1155_v38 = vrot.slane %v1147_v31, %v2018_v25  ;;  %v1124_v63 = vmul.f32 %v1119_v34, %v2064_v44  ;;  %v1125_v13 = vmul.f32 %v1123_v56, %v2064_v44 }
 0x355   : > { %v1102_v55 = vadd.f32 %v1100_v54, %v1082_v27  ;;  %v1103_v1 = vadd.f32 %v1101_v58, %v1083_v29  ;;  %v1136_v33 = vmul.f32 %v1131_v47, %v2091_v60  ;;  %v1137_v43 = vmul.f32 %v1135_v26, %v2091_v60 }
 0x356   : > { %v1163_v5 = vrot.slane %v1146_v30, %v2054_v39  ;;  %v1167_v19 = vrot.slane %v1147_v31, %v2054_v39  ;;  %v1200_v18 = vsel %vm471_vm3, %v1197_v11, %v1199_v41  ;;  %v1201_v16 = vsel %vm471_vm3, %v1199_v41, %v1197_v11 }
 0x357   : > { %v1114_v17 = vadd.f32 %v1112_v59, %v1102_v55  ;;  %v1115_v46 = vadd.f32 %v1113_v35, %v1103_v1  ;;  %v1156_v48 = vmul.f32 %v1151_v37, %v2136_v3  ;;  %v1157_v44 = vmul.f32 %v1155_v38, %v2136_v3 }
 0x358   : > { %v1175_v51 = vrot.slane %v1146_v30, %v2059_v42  ;;  %v1179_v60 = vrot.slane %v1147_v31, %v2059_v42  ;;  %v1202_v34 = vmul.f32 %v1201_v16, %v2147_v20  ;;  %v1203_v56 = vmul.f32 %v1200_v18, %v2151_v21  ;;  %v1301_v16 = vpop.permute.xlu0 %1300 }
 0x359   : > { %v1126_v45 = vadd.f32 %v1124_v63, %v1114_v17  ;;  %v1127_v15 = vadd.f32 %v1125_v13, %v1115_v46  ;;  %v1168_v27 = vmul.f32 %v1163_v5, %v2009_v22  ;;  %v1169_v29 = vmul.f32 %v1167_v19, %v2009_v22 }
 0x35a   : > { %v1187_v47 = vrot.slane %v1146_v30, %v2081_v53  ;;  %v1191_v3 = vrot.slane %v1147_v31, %v2081_v53  ;;  %v1180_v26 = vmul.f32 %v1175_v51, %v2118_v40  ;;  %v1181_v55 = vmul.f32 %v1179_v60, %v2118_v40 }
 0x35b   : > { %v1138_v52 = vadd.f32 %v1136_v33, %v1126_v45  ;;  %v1139_v7 = vadd.f32 %v1137_v43, %v1127_v15  ;;  %v1207_v20 = vrot.slane %v1202_v34, %v2018_v25  ;;  %v1211_v21 = vrot.slane %v1203_v56, %v2018_v25  ;;  %v1303_v45 = vpop.permute.xlu1 %1302 }
 0x35c   : > { %v1219_v35 = vrot.slane %v1202_v34, %v2054_v39  ;;  %v1223_v22 = vrot.slane %v1203_v56, %v2054_v39  ;;  %v1192_v30 = vmul.f32 %v1187_v47, %v2130_v57  ;;  %v1193_v31 = vmul.f32 %v1191_v3, %v2130_v57 }
 0x35d   : > { %v1158_v54 = vadd.f32 %v1156_v48, %v1138_v52  ;;  %v1159_v58 = vadd.f32 %v1157_v44, %v1139_v7  ;;  %v1231_v41 = vrot.slane %v1202_v34, %v2059_v42  ;;  %v1235_v40 = vrot.slane %v1203_v56, %v2059_v42 }
 0x35e   : > { %v1212_v63 = vmul.f32 %v1207_v20, %v2173_v9  ;;  %v1213_v13 = vmul.f32 %v1211_v21, %v2173_v9  ;;  %v1224_v11 = vmul.f32 %v1219_v35, %v2030_v28  ;;  %v1225_v33 = vmul.f32 %v1223_v22, %v2030_v28  ;;  %v2756_v35 = vld [vmem:[#allocation7_spill] sm:$0xff] }
 0x35f   : > { %v1170_v1 = vadd.f32 %v1168_v27, %v1158_v54  ;;  %v1171_v59 = vadd.f32 %v1169_v29, %v1159_v58  ;;  %v1243_v19 = vrot.slane %v1202_v34, %v2081_v53  ;;  %v1247_v57 = vrot.slane %v1203_v56, %v2081_v53  ;;  %v2754_v27 = vld [vmem:[#allocation6_spill] sm:$0xff]  ;;  %v2755_v58 = vld [vmem:[#allocation8_spill] sm:$0xff]  ;;  %v1359_v21 = vpop.permute.xlu1 %1358 }
 0x360   : > { %v1259_v15 = vrot.slane %v2408_v10, %v2018_v25  ;;  %v1255_v18 = vrot.slane %v2402_v8, %v2018_v25  ;;  %v1236_v44 = vmul.f32 %v1231_v41, %v2161_v49  ;;  %v1237_v28 = vmul.f32 %v1235_v40, %v2161_v49 }
 0x361   : > { %v1182_v37 = vadd.f32 %v1180_v26, %v1170_v1  ;;  %v1183_v38 = vadd.f32 %v1181_v55, %v1171_v59  ;;  %v1271_v51 = vrot.slane %v2408_v10, %v2054_v39  ;;  %v1267_v60 = vrot.slane %v2402_v8, %v2054_v39 }
 0x362   : > { %v1304_v52 = vsel %vm658_vm4, %v1301_v16, %v1303_v45  ;;  %v1305_v7 = vsel %vm658_vm4, %v1303_v45, %v1301_v16  ;;  %v1248_v29 = vmul.f32 %v1243_v19, %v2754_v27  ;;  %v1249_v54 = vmul.f32 %v1247_v57, %v2754_v27 }
 0x363   : > { %v1194_v17 = vadd.f32 %v1192_v30, %v1182_v37  ;;  %v1195_v46 = vadd.f32 %v1193_v31, %v1183_v38  ;;  %v1261_v49 = vmul.f32 %v1259_v15, %v2755_v58  ;;  %v1260_v47 = vmul.f32 %v1255_v18, %v2755_v58  ;;  %v1357_v38 = vpop.permute.xlu0 %1356 }
 0x364   : > { %v1283_v3 = vrot.slane %v2408_v10, %v2059_v42  ;;  %v1279_v26 = vrot.slane %v2402_v8, %v2059_v42  ;;  %v1306_v59 = vmul.f32 %v1304_v52, %v2227_v2  ;;  %v1307_v20 = vmul.f32 %v1305_v7, %v2230_v6 }
 0x365   : > { %v1214_v43 = vadd.f32 %v1212_v63, %v1194_v17  ;;  %v1215_v5 = vadd.f32 %v1213_v13, %v1195_v46  ;;  %v1273_v22 = vmul.f32 %v1271_v51, %v2756_v35  ;;  %v1295_v37 = vrot.slane %v2408_v10, %v2081_v53 }
 0x366   : > { %v1272_v41 = vmul.f32 %v1267_v60, %v2756_v35  ;;  %v1291_v40 = vrot.slane %v2402_v8, %v2081_v53  ;;  %v1285_v17 = vmul.f32 %v1283_v3, %v2192_v62  ;;  %v1284_v2 = vmul.f32 %v1279_v26, %v2192_v62  ;;  %v2759_v60 = vld [vmem:[#allocation11_spill] sm:$0xff] }
 0x367   : > { %v1226_v48 = vadd.f32 %v1224_v11, %v1214_v43  ;;  %v1227_v9 = vadd.f32 %v1225_v33, %v1215_v5  ;;  %v1360_v6 = vsel %vm740_vm5, %v1357_v38, %v1359_v21  ;;  %v1361_v46 = vsel %vm740_vm5, %v1359_v21, %v1357_v38  ;;  %v2757_v5 = vld [vmem:[#allocation9_spill] sm:$0xff] }
 0x368   : > { %v1311_v13 = vrot.slane %v1306_v59, %v2018_v25  ;;  %v1315_v11 = vrot.slane %v1307_v20, %v2018_v25  ;;  %v1323_v33 = vrot.slane %v1306_v59, %v2054_v39  ;;  %v1327_v8 = vrot.slane %v1307_v20, %v2054_v39 }
 0x369   : > { %v1238_v34 = vadd.f32 %v1236_v44, %v1226_v48  ;;  %v1239_v56 = vadd.f32 %v1237_v28, %v1227_v9  ;;  %v1297_v19 = vmul.f32 %v1295_v37, %v2757_v5  ;;  %v1296_v57 = vmul.f32 %v1291_v40, %v2757_v5  ;;  %v2758_v44 = vld [vmem:[#allocation10_spill] sm:$0xff] }
 0x36a   : > { %v1335_v45 = vrot.slane %v1306_v59, %v2059_v42  ;;  %v1339_v15 = vrot.slane %v1307_v20, %v2059_v42  ;;  %v1362_v18 = vmul.f32 %v1360_v6, %v2271_v61  ;;  %v1363_v16 = vmul.f32 %v1361_v46, %v2275_v50  ;;  %v1413_v61 = vpop.permute.xlu0 %1412  ;;  %v2761_v46 = vld [vmem:[#allocation14_spill] sm:$0xff] }
 0x36b   : > { %v1250_v55 = vadd.f32 %v1248_v29, %v1238_v34  ;;  %v1251_v1 = vadd.f32 %v1249_v54, %v1239_v56  ;;  %v1316_v28 = vmul.f32 %v1311_v13, %v2758_v44  ;;  %v1317_v51 = vmul.f32 %v1315_v11, %v2758_v44  ;;  %v1415_v34 = vpop.permute.xlu1 %1414 }
 0x36c   : > { %v1328_v52 = vmul.f32 %v1323_v33, %v2759_v60  ;;  %v1329_v7 = vmul.f32 %v1327_v8, %v2759_v60  ;;  %v1347_v29 = vrot.slane %v1306_v59, %v2081_v53  ;;  %v1351_v54 = vrot.slane %v1307_v20, %v2081_v53 }
 0x36d   : > { %v1262_v30 = vadd.f32 %v1260_v47, %v1250_v55  ;;  %v1263_v31 = vadd.f32 %v1261_v49, %v1251_v1  ;;  %v1340_v50 = vmul.f32 %v1335_v45, %v2260_v32  ;;  %v1341_v58 = vmul.f32 %v1339_v15, %v2260_v32 }
 0x36e   : > { %v1367_v49 = vrot.slane %v1362_v18, %v2018_v25  ;;  %v1371_v47 = vrot.slane %v1363_v16, %v2018_v25  ;;  %v1416_v55 = vsel %vm822_vm6, %v1413_v61, %v1415_v34  ;;  %v1417_v1 = vsel %vm822_vm6, %v1415_v34, %v1413_v61  ;;  %v2765_v61 = vld [vmem:[#allocation20_spill] sm:$0xff] }
 0x36f   : > { %v1274_v63 = vadd.f32 %v1272_v41, %v1262_v30  ;;  %v1275_v10 = vadd.f32 %v1273_v22, %v1263_v31  ;;  %v1379_v59 = vrot.slane %v1362_v18, %v2054_v39  ;;  %v1383_v20 = vrot.slane %v1363_v16, %v2054_v39  ;;  %v2760_v31 = vld [vmem:[#allocation15_spill] sm:$0xff]  ;;  %v1471_v33 = vpop.permute.xlu1 %1470 }
 0x370   : > { %v1352_v32 = vmul.f32 %v1347_v29, %v2256_v14  ;;  %v1353_v22 = vmul.f32 %v1351_v54, %v2256_v14  ;;  %v1372_v37 = vmul.f32 %v1367_v49, %v2264_v4  ;;  %v1373_v38 = vmul.f32 %v1371_v47, %v2264_v4  ;;  %v2767_v49 = vld [vmem:[#allocation16_spill] sm:$0xff] }
 0x371   : > { %v1287_v43 = vadd.f32 %v1285_v17, %v1275_v10  ;;  %v1286_v62 = vadd.f32 %v1284_v2, %v1274_v63  ;;  %v1418_v30 = vmul.f32 %v1416_v55, %v2308_v0  ;;  %v1419_v41 = vmul.f32 %v1417_v1, %v2760_v31 }
 0x372   : > { %v1391_v2 = vrot.slane %v1362_v18, %v2059_v42  ;;  %v1395_v6 = vrot.slane %v1363_v16, %v2059_v42  ;;  %v1384_v63 = vmul.f32 %v1379_v59, %v2761_v46  ;;  %v1385_v10 = vmul.f32 %v1383_v20, %v2761_v46  ;;  %v2768_v20 = vld [vmem:[#allocation17_spill] sm:$0xff] }
 0x373   : > { %v1299_v48 = vadd.f32 %v1297_v19, %v1287_v43  ;;  %v1298_v9 = vadd.f32 %v1296_v57, %v1286_v62  ;;  %v1403_v11 = vrot.slane %v1362_v18, %v2081_v53  ;;  %v1407_v4 = vrot.slane %v1363_v16, %v2081_v53  ;;  %v1469_v43 = vpop.permute.xlu0 %1468  ;;  %v2762_v62 = vld [vmem:[#allocation12_spill] sm:$0xff] }
 0x374   : > { %v1423_v0 = vrot.slane %v1418_v30, %v2018_v25  ;;  %v1427_v8 = vrot.slane %v1419_v41, %v2018_v25  ;;  %v1396_v57 = vmul.f32 %v1391_v2, %v2762_v62  ;;  %v1397_v45 = vmul.f32 %v1395_v6, %v2762_v62  ;;  %v2769_v6 = vld [vmem:[#allocation19_spill] sm:$0xff] }
 0x375   : > { %v1318_v56 = vadd.f32 %v1316_v28, %v1298_v9  ;;  %v1319_v27 = vadd.f32 %v1317_v51, %v1299_v48  ;;  %v1435_v15 = vrot.slane %v1418_v30, %v2054_v39  ;;  %v1439_v48 = vrot.slane %v1419_v41, %v2054_v39  ;;  %v2763_v28 = vld [vmem:[#allocation13_spill] sm:$0xff] }
 0x376   : > { %v1472_v18 = vsel %vm904_vm7, %v1469_v43, %v1471_v33  ;;  %v1473_v16 = vsel %vm904_vm7, %v1471_v33, %v1469_v43  ;;  %v1408_v51 = vmul.f32 %v1403_v11, %v2763_v28  ;;  %v1409_v60 = vmul.f32 %v1407_v4, %v2763_v28 }
 0x377   : > { %v1330_v3 = vadd.f32 %v1328_v52, %v1318_v56  ;;  %v1331_v26 = vadd.f32 %v1329_v7, %v1319_v27  ;;  %v2764_v52 = vld [vmem:[#allocation18_spill] sm:$0xff]  ;;  %v1447_v56 = vrot.slane %v1418_v30, %v2059_v42  ;;  %v1451_v27 = vrot.slane %v1419_v41, %v2059_v42 }
 0x378   : > { %v1428_v7 = vmul.f32 %v1423_v0, %v2764_v52  ;;  %v1429_v34 = vmul.f32 %v1427_v8, %v2764_v52  ;;  %v1440_v47 = vmul.f32 %v1435_v15, %v2767_v49  ;;  %v1459_v1 = vrot.slane %v1418_v30, %v2081_v53 }
 0x379   : > { %v1342_v21 = vadd.f32 %v1340_v50, %v1330_v3  ;;  %v1343_v35 = vadd.f32 %v1341_v58, %v1331_v26  ;;  %v1474_v50 = vmul.f32 %v2765_v61, %v1472_v18  ;;  %v1475_v58 = vmul.f32 %v2766_v24, %v1473_v16  ;;  %v1751_v61 = vld [vmem:[%s2699_s2] sm:$0xf] }
 0x37a   : > { %v1441_v3 = vmul.f32 %v1439_v48, %v2767_v49  ;;  %v1463_v59 = vrot.slane %v1419_v41, %v2081_v53  ;;  %v1464_v30 = vmul.f32 %v1459_v1, %v2769_v6 }
 0x37b   : > { %v1354_v40 = vadd.f32 %v1352_v32, %v1342_v21  ;;  %v1355_v17 = vadd.f32 %v1353_v22, %v1343_v35  ;;  %v1452_v21 = vmul.f32 %v1447_v56, %v2768_v20  ;;  %v1453_v35 = vmul.f32 %v1451_v27, %v2768_v20  ;;  %v1752_v20 = vld [vmem:[%s1916_s9] sm:$0xff]  ;;  %s1753_s9 = scalar_lea.vmem %s2657_s28, 128 }
 0x37c   : > { %v1491_v31 = vrot.slane %v1474_v50, %v2054_v39  ;;  %v1465_v41 = vmul.f32 %v1463_v59, %v2769_v6  ;;  %v1503_v46 = vrot.slane %v1474_v50, %v2059_v42  ;;  %v1515_v33 = vrot.slane %v1474_v50, %v2081_v53  ;;  %p1754_p11 = scmp.ne.s32.totalorder %s2657_s28, %s1753_s9  ;;  %p1761_p1 = scmp.lt.s32.totalorder %s1759_s13, %s1753_s9 }
 0x37d   : > { %v1374_v13 = vadd.f32 %v1372_v37, %v1354_v40  ;;  %v1375_v14 = vadd.f32 %v1373_v38, %v1355_v17  ;;  %v1479_v37 = vrot.slane %v1474_v50, %v2018_v25  ;;  %v1483_v38 = vrot.slane %v1475_v58, %v2018_v25 }
 0x37e   : > { %v1495_v40 = vrot.slane %v1475_v58, %v2054_v39  ;;  %v1496_v4 = vmul.f32 %v1491_v31, %v2379_v23  ;;  %v1519_v0 = vrot.slane %v1475_v58, %v2081_v53  ;;  %v1520_v15 = vmul.f32 %v1515_v33, %v2389_v12  ;;  %p1755_p12 = pnand %p1754_p11, %p1893_p5  ;;  %p1762_p2 = por %p1761_p1, %p1760_p0 }
 0x37f   : > { %v1386_v5 = vadd.f32 %v1384_v63, %v1374_v13  ;;  %v1387_v19 = vadd.f32 %v1385_v10, %v1375_v14  ;;  %v1507_v63 = vrot.slane %v1475_v58, %v2059_v42  ;;  %v2770_v14 = vld [vmem:[#allocation22_spill] sm:$0xff]  ;;  %v1508_v42 = vmul.f32 %v1503_v46, %v2377_v36 }
 0x380   : > { %v1484_v11 = vmul.f32 %v1479_v37, %v2770_v14  ;;  %v1485_v25 = vmul.f32 %v1483_v38, %v2770_v14  ;;  %v1497_v39 = vmul.f32 %v1495_v40, %v2379_v23  ;;  %v1521_v48 = vmul.f32 %v1519_v0, %v2389_v12  ;;  %p1756_p13 = pneg %p1755_p12 }
 0x381   : > { %v1398_v9 = vadd.f32 %v1396_v57, %v1386_v5  ;;  %v1399_v44 = vadd.f32 %v1397_v45, %v1387_v19  ;;  %v1509_v62 = vmul.f32 %v1507_v63, %v2377_v36 }
 0x382   : > { %p1763_p3 = pnand %p1762_p2, %p1756_p13 }
 0x383   : > { %v1410_v29 = vadd.f32 %v1408_v51, %v1398_v9  ;;  %v1411_v54 = vadd.f32 %v1409_v60, %v1399_v44 }
 0x385   : > { %v1430_v26 = vadd.f32 %v1428_v7, %v1410_v29  ;;  %v1431_v55 = vadd.f32 %v1429_v34, %v1411_v54 }
 0x387   : > { %v1442_v32 = vadd.f32 %v1440_v47, %v1430_v26  ;;  %v1443_v22 = vadd.f32 %v1441_v3, %v1431_v55 }
 0x389   : > { %v1454_v17 = vadd.f32 %v1452_v21, %v1442_v32  ;;  %v1455_v2 = vadd.f32 %v1453_v35, %v1443_v22  ;;  %v2771_v35 = vld [vmem:[#allocation5_spill] sm:$0xff] }
 0x38b   : > { %v1466_v10 = vadd.f32 %v1464_v30, %v1454_v17  ;;  %v1467_v13 = vadd.f32 %v1465_v41, %v1455_v2 }
 0x38d   : > { %v1486_v8 = vadd.f32 %v1484_v11, %v1466_v10  ;;  %v1487_v43 = vadd.f32 %v1485_v25, %v1467_v13 }
 0x38f   : > { %v1498_v5 = vadd.f32 %v1496_v4, %v1486_v8  ;;  %v1499_v19 = vadd.f32 %v1497_v39, %v1487_v43 }
 0x391   : > { %v1510_v57 = vadd.f32 %v1508_v42, %v1498_v5  ;;  %v1511_v45 = vadd.f32 %v1509_v62, %v1499_v19 }
 0x393   : > { %v1522_v18 = vadd.f32 %v1520_v15, %v1510_v57  ;;  %v1523_v23 = vadd.f32 %v1521_v48, %v1511_v45 }
 0x395   : > { %v1524_v16 = vsel %vm982_vm8, %v1522_v18, 0.0  ;;  %v1525_v53 = vsel %vm982_vm8, %v1523_v23, 0.0  ;;  %v1530_v9 = vmul.f32 %v1522_v18, %v1522_v18  ;;  %v1531_v44 = vmul.f32 %v1523_v23, %v1523_v23 }
 0x396   : > { %v1526_v28 = vadd.f32 %v1525_v53, %v1524_v16 }
 0x397   : > { %v1532_v51 = vsel %vm982_vm8, %v1530_v9, 0.0  ;;  %v1533_v60 = vsel %vm982_vm8, %v1531_v44, 0.0 }
 0x398   : > { %1527 = vadd.xlane.f32.xlu0 %v1526_v28  ;;  %v1534_v36 = vadd.f32 %v1533_v60, %v1532_v51 }
 0x39a   : > { %1535 = vadd.xlane.f32.xlu1 %v1534_v36 }
 0x425   : > { %v1528_v52 = vpop.xlane.xlu0 %1527 }
 0x426   : > { %v1529_v7 = vmul.f32 0.00390625, %v1528_v52 }
 0x427   : > { %v1536_v12 = vpop.xlane.xlu1 %1535 }
 0x428   : > { %v1538_v34 = vmul.f32 %v1529_v7, %v1529_v7  ;;  %v1537_v56 = vmul.f32 0.00390625, %v1536_v12 }
 0x42a   : > { %v1539_v27 = vsub.f32 %v1537_v56, %v1538_v34 }
 0x42c   : > { %v1540_v29 = vadd.f32 1e-05, %v1539_v27 }
 0x42e   : > { %1749 = vrsqrt.f32 %v1540_v29 }
 0x438   : > { %v1750_v54 = vpop.eup %1749 }
 0x439   : > { %v1542_v50 = vmul.f32 %v1751_v61, %v1750_v54 }
 0x43b   : > { %1551 = vperm.xlu1 %1744, %v1542_v50   ;;  %v1543_v24 = vmul.f32 %v1542_v50, %v1529_v7 }
 0x43d   : > { %1545 = vrot.lane.b32.xlu0 %v1543_v24, %s1825_s7 }
 0x4af   : > { %v1546_v58 = vpop.permute.xlu0 %1545 }
 0x4b0   : > { %v1548_v49 = vsub.f32 %v1751_v61, %v1546_v58 }
 0x4b2   : > { %1558 = vperm.xlu0 %1745, %v1548_v49  }
 0x4ba   : > { %v1552_v47 = vpop.permute.xlu1 %1551 }
 0x4bb   : > { %v1554_v3 = vmul.f32 %v1552_v47, %v1522_v18  ;;  %v1555_v26 = vmul.f32 %v1552_v47, %v1523_v23 }
 0x531   : > { %v1559_v55 = vpop.permute.xlu0 %1558 }
 0x532   : > { %v1561_v1 = vadd.f32 %v1559_v55, %v1554_v3  ;;  %v1562_v59 = vadd.f32 %v1559_v55, %v1555_v26 }
 0x534   : > { %v1563_v21 = vadd.f32 %v1752_v20, %v1561_v1  ;;  %v1564_v32 = vadd.f32 %v1562_v59, %v2771_v35 }
 0x536   : > { %vm1565_vm11 = vcmp.ge.f32.partialorder %v1563_v21, 0.0  ;;  %vm1566_vm12 = vcmp.ge.f32.partialorder %v1564_v32, 0.0  ;;  %v1567_v22 = vmul.f32 0.01, %v1563_v21  ;;  %v1568_v37 = vmul.f32 0.01, %v1564_v32 }
 0x538   : > { %v1569_v38 = vsel %vm1565_vm11, %v1563_v21, %v1567_v22  ;;  %v1570_v31 = vsel %vm1566_vm12, %v1564_v32, %v1568_v37 }
 0x539   : > { %v1573_v40 = vcombine.low %v1569_v38, %v1570_v31 }
 0x53b   : > { %1575 = vst [vmem:[%s190_s27] sm:$0xff] %v1573_v40 }
 0x53c   : > { %1766 = shalt.err (!%p1763_p3)
}
 0x53d   : > { %s1767_s14 = scalar_lea.hbm %s2655_s6, 128  ;;  %s1771_s12 = scalar_lea.hbm %s2701_s4, 256 }
 0x53e   : > { %p1768_p4 = scmp.ne.s32.totalorder %s2655_s6, %s1767_s14  ;;  %p1772_p9 = scmp.lt.u32.totalorder %s2655_s6, %s2701_s4 }
 0x53f   : > { %p1773_p10 = scmp.lt.u32.totalorder %s1771_s12, %s1767_s14  ;;  %p1775_p12 = scmp.lt.u32.totalorder %s1767_s14, %s2655_s6 }
 0x540   : > { %p1769_p7 = pnand %p1768_p4, %p1893_p5 }
 0x541   : > { %p1774_p11 = por %p1773_p10, %p1772_p9 }
 0x542   : > { %p1770_p8 = pneg %p1769_p7 }
 0x543   : > { %p1776_p13 = por %p1775_p12, %p1774_p11 }
 0x545   : > { %p1777_p0 = pnand %p1776_p13, %p1770_p8 }
 0x547   : > { %1780 = shalt.err (!%p1777_p0)
}
 0x548   : > { %1666 = dma.vmem_to_hbm [thread:$0]  (%p1893_p5), %s2657_s28, 128, %s2655_s6, %s1577_s19  }
 0x549 PF: > { %p1672_p1 = scmp.ge.s32.totalorder %s1815_s18, 2  ;;  %s1603_s30 = sand.u32 1, %s1803_s15  }
 0x54a   : > { %s1604_s8 = scalar_lea.sflag [#allocation3], %s1603_s30 }
 0x54b   : > { %p1669_p2 = pnand %p1672_p1, %p1897_p6 }
 0x54d   : > { %1798 = dma.done.wait (!%p1669_p2), %s1604_s8, 128  }
 0x54e   : > { %1800 = vsyncadd (!%p1669_p2), %s1604_s8, 4294967168  ;;  %p14_p3 = scmp.ge.s32.totalorder %s1880_s21, 4   ;;  %s2772_s15 = smov %s1807_s16 }
 0x54f   : > { %s2773_s16 = smov %s1811_s17  ;;  %s2774_s17 = smov %s1891_s24 }
 0x550   : > { %s2775_s18 = smov %s1880_s21  ;;  %16 = sbr.rel (!%p14_p3) target bundleno = 3 (0x3), region = 71 }
 0x557   :  { %1609 = vsyncpa [#allocation3], 1 }
 0x558   :  { %1611 = vsyncpa [#allocation3 + $0x1], 1 }

</bundles_post_ra>
